<compile_context>
chip_gen: v6e
topology: v6e:2x2x1
jax: 0.10.0
libtpu: 0.0.40
codegen_flags: <defaults>
</compile_context>

<pallas_src>
import math
import jax
import jax.numpy as jnp
from jax import lax
from jax.experimental import pallas as pl
from jax.experimental.pallas import tpu as pltpu

_EPS = 1e-5  # PyTorch InstanceNorm2d default


def in_conv(x_nchw, w5, w3):
    """InConv forward (downsample_ratio=2).

    x_nchw: (N, Cin, H, W)   w5: (Cout, Cin, 5, 5)   w3: (Cout, Cout, 3, 3)   (PyTorch layouts)
    returns (N, Cout, H//2, W//2)
    """
    N, Cin, H, W = x_nchw.shape
    assert H % 2 == 0 and W % 2 == 0, "spatial dims must be even for the stride-2 stage"
    C = w5.shape[0]
    Ho, Wo = H // 2, W // 2

    Wh = Wo + 2          # half of the pad-2 padded row width: (W+4)//2
    Hp = H + 5           # 2 pad rows on top, 3 on the bottom (slack keeps tap slices in-bounds)
    L1 = H * Wh          # pixel-axis length of each stage-1 column-parity half
    P2 = 2 * Wh          # over-wide row pitch of the stage-2 pixel axis
    L2 = Ho * P2         # = H * Wh
    inv_n1 = 1.0 / float(H * W)
    inv_n2 = 1.0 / float(Ho * Wo)

    # ---- wrapper-side layout plumbing (all on the tiny input / weight tensors) ----
    xpad = jnp.pad(x_nchw.astype(jnp.float32), ((0, 0), (0, 0), (2, 3), (2, 2)))
    xe = xpad[:, :, :, 0::2].reshape(N, Cin, Hp * Wh)   # even padded columns
    xo = xpad[:, :, :, 1::2].reshape(N, Cin, Hp * Wh)   # odd  padded columns
    # weights -> (Cout, taps*Cin), column = (kh*K + kw)*Cin + ci
    w1 = jnp.transpose(w5, (0, 2, 3, 1)).reshape(C, 25 * Cin).astype(jnp.float32)
    w2 = jnp.transpose(w3, (0, 2, 3, 1)).reshape(C, 9 * C).astype(jnp.float32)

    def kernel(xe_ref, xo_ref, w1_ref, w2_ref, o_ref,
               slab_e, slab_o, yep, yop, slab2):
        # ---------------- Stage 1: 5x5 conv, stride 1, pad 2 ----------------
        # Two im2col slabs (even / odd output columns).  Every tap is one contiguous,
        # lane-dense (Cin, L1) copy out of the flat padded input (no strided loads).
        for kh in range(5):
            for kw in range(5):
                rows = slice((kh * 5 + kw) * Cin, (kh * 5 + kw + 1) * Cin)
                se = kh * Wh + kw // 2          # even output columns read parity kw%2
                so = kh * Wh + (kw + 1) // 2    # odd  output columns read parity (kw+1)%2
                if kw % 2 == 0:
                    slab_e[rows, :] = xe_ref[0, :, se:se + L1]
                    slab_o[rows, :] = xo_ref[0, :, so:so + L1]
                else:
                    slab_e[rows, :] = xo_ref[0, :, se:se + L1]
                    slab_o[rows, :] = xe_ref[0, :, so:so + L1]

        w1v = w1_ref[...]
        h1e = jnp.dot(w1v, slab_e[...], preferred_element_type=jnp.float32)   # (C, L1)
        h1o = jnp.dot(w1v, slab_o[...], preferred_element_type=jnp.float32)   # (C, L1)

        # Single-pass masked instance norm (+ReLU) over the H*W valid pixels.
        col1 = lax.broadcasted_iota(jnp.int32, (1, L1), 1) % Wh
        m1 = col1 < Wo
        s1 = (jnp.sum(jnp.where(m1, h1e, 0.0), axis=1, keepdims=True)
              + jnp.sum(jnp.where(m1, h1o, 0.0), axis=1, keepdims=True))
        q1 = (jnp.sum(jnp.where(m1, h1e * h1e, 0.0), axis=1, keepdims=True)
              + jnp.sum(jnp.where(m1, h1o * h1o, 0.0), axis=1, keepdims=True))
        mean1 = s1 * inv_n1
        var1 = jnp.maximum(q1 * inv_n1 - mean1 * mean1, 0.0)
        sc1 = lax.rsqrt(var1 + _EPS)
        y1e = jnp.maximum((h1e - mean1) * sc1, 0.0)
        y1o = jnp.maximum((h1o - mean1) * sc1, 0.0)

        # ---------------- Stage 2: 3x3 conv, stride 2, pad 1 ----------------
        # Padded column-phase buffers: buffer row rho holds stage-1 row rho-1; row 0 is the
        # conv zero padding.  Only the thin halo is zeroed (per step: scratch is per-core
        # under the 'parallel' batch axis, so a program_id==0 guard would be unsafe).
        yep[:, 0:Wh] = jnp.zeros((C, Wh), jnp.float32)
        yep[:, (H + 1) * Wh:] = jnp.zeros((C, 2 * Wh), jnp.float32)
        yop[:, 0:Wh + 1] = jnp.zeros((C, Wh + 1), jnp.float32)
        yop[:, (H + 1) * Wh + 1:] = jnp.zeros((C, 2 * Wh - 1), jnp.float32)

        yep[:, Wh:Wh + L1] = y1e
        # Zero the last (garbage) element of every Wh-group so the shifted store below
        # deposits zeros on the "column -1" pad slots of the next buffer row.
        y1o = jnp.where(col1 == Wh - 1, 0.0, y1o)
        yop[:, Wh + 1:Wh + 1 + L1] = y1o

        # im2col for the strided conv: each tap is one contiguous lane-dense copy
        # (column phase picks the buffer, row tap / column tap pick the static offset).
        for kh2 in range(3):
            for kw2 in range(3):
                rows = slice((kh2 * 3 + kw2) * C, (kh2 * 3 + kw2 + 1) * C)
                if kw2 == 1:
                    slab2[rows, :] = yep[:, kh2 * Wh:kh2 * Wh + L2]
                else:
                    s0 = kh2 * Wh + (1 if kw2 == 2 else 0)
                    slab2[rows, :] = yop[:, s0:s0 + L2]

        h2 = jnp.dot(w2_ref[...], slab2[...], preferred_element_type=jnp.float32)  # (C, L2)

        col2 = lax.broadcasted_iota(jnp.int32, (1, L2), 1) % P2
        m2 = col2 < Wo
        s2 = jnp.sum(jnp.where(m2, h2, 0.0), axis=1, keepdims=True)
        q2 = jnp.sum(jnp.where(m2, h2 * h2, 0.0), axis=1, keepdims=True)
        mean2 = s2 * inv_n2
        var2 = jnp.maximum(q2 * inv_n2 - mean2 * mean2, 0.0)
        y2 = jnp.maximum((h2 - mean2) * lax.rsqrt(var2 + _EPS), 0.0)

        # Lane-dense, channels-first store; valid pixels sit at (p % P2) < Wo.
        o_ref[0] = y2.astype(o_ref.dtype)

    scratch_bytes = 4 * (2 * 25 * Cin * L1 + 2 * C * (H + 3) * Wh + 9 * C * L2)
    io_bytes = 4 * (2 * 2 * Cin * Hp * Wh + 2 * C * L2 + C * 25 * Cin + C * 9 * C)
    vmem_limit = int(min(64 * 1024 * 1024,
                         max(16 * 1024 * 1024, 2 * (scratch_bytes + io_bytes))))

    out = pl.pallas_call(
        kernel,
        out_shape=jax.ShapeDtypeStruct((N, C, L2), x_nchw.dtype),
        grid_spec=pltpu.PrefetchScalarGridSpec(
            num_scalar_prefetch=0,
            grid=(N,),
            in_specs=[
                pl.BlockSpec((1, Cin, Hp * Wh), lambda n: (n, 0, 0)),
                pl.BlockSpec((1, Cin, Hp * Wh), lambda n: (n, 0, 0)),
                pl.BlockSpec((C, 25 * Cin), lambda n: (0, 0)),
                pl.BlockSpec((C, 9 * C), lambda n: (0, 0)),
            ],
            out_specs=pl.BlockSpec((1, C, L2), lambda n: (n, 0, 0)),
            scratch_shapes=[
                pltpu.VMEM((25 * Cin, L1), jnp.float32),     # stage-1 slab, even output cols
                pltpu.VMEM((25 * Cin, L1), jnp.float32),     # stage-1 slab, odd output cols
                pltpu.VMEM((C, (H + 3) * Wh), jnp.float32),  # padded even-column phase buffer
                pltpu.VMEM((C, (H + 3) * Wh), jnp.float32),  # padded odd-column phase buffer
                pltpu.VMEM((9 * C, L2), jnp.float32),        # stage-2 slab
            ],
        ),
        compiler_params=pltpu.CompilerParams(
            dimension_semantics=("parallel",),
            vmem_limit_bytes=vmem_limit,
        ),
    )(xe, xo, w1, w2)

    # Drop the over-wide garbage lanes: cheap reshape + slice on the (smallest) output tensor.
    return out.reshape(N, C, Ho, P2)[:, :, :, :Wo]


def init_in_conv_params(key, in_channels, out_channels):
    """PyTorch-style Conv2d default init (uniform(-1/sqrt(fan_in), 1/sqrt(fan_in))),
    weights stored in PyTorch (Cout, Cin, kh, kw) layout.  Conv biases omitted: the following
    InstanceNorm (per-instance stats) removes any per-channel constant -> same forward output."""
    k1, k2 = jax.random.split(key)
    b1 = 1.0 / math.sqrt(in_channels * 25)
    w5 = jax.random.uniform(k1, (out_channels, in_channels, 5, 5), jnp.float32, -b1, b1)
    b2 = 1.0 / math.sqrt(out_channels * 9)
    w3 = jax.random.uniform(k2, (out_channels, out_channels, 3, 3), jnp.float32, -b2, b2)
    return w5, w3


def _reference(x, w5, w3):
    """Pure-JAX reference of the InConv forward (bias-free, matching the kernel)."""
    def conv(h, w, stride, pad):
        return lax.conv_general_dilated(
            h, w, window_strides=(stride, stride),
            padding=((pad, pad), (pad, pad)),
            dimension_numbers=("NCHW", "OIHW", "NCHW"))

    def in_relu(h):
        mean = jnp.mean(h, axis=(2, 3), keepdims=True)
        var = jnp.mean(jnp.square(h - mean), axis=(2, 3), keepdims=True)
        return jnp.maximum((h - mean) * lax.rsqrt(var + _EPS), 0.0)

    return in_relu(conv(in_relu(conv(x, w5, 1, 2)), w3, 2, 1))


if __name__ == "__main__":
    key = jax.random.PRNGKey(0)
    k_x, k_w = jax.random.split(key)

    N, Cin, H, W = 2, 4, 16, 16
    Cout = 8

    x = jax.random.normal(k_x, (N, Cin, H, W), jnp.float32)
    w5, w3 = init_in_conv_params(k_w, Cin, Cout)

    out = jax.block_until_ready(in_conv(x, w5, w3))

    assert out.shape == (N, Cout, H // 2, W // 2), out.shape
    assert out.dtype == jnp.float32
    assert bool(jnp.all(jnp.isfinite(out)))

    ref = jax.block_until_ready(_reference(x, w5, w3))
    err = float(jnp.max(jnp.abs(out - ref)))
    assert err < 5e-2, f"max |pallas - reference| = {err}"

    print("KERNEL_OK")
</pallas_src>

<mosaic_0001>
module attributes {stable_mosaic.version = 11 : i64} {
  func.func @kernel(%arg0: i32, %arg1: memref<1x4x210xf32, #tpu.memory_space<vmem>>, %arg2: memref<1x4x210xf32, #tpu.memory_space<vmem>>, %arg3: memref<8x100xf32, #tpu.memory_space<vmem>>, %arg4: memref<8x72xf32, #tpu.memory_space<vmem>>, %arg5: memref<1x8x160xf32, #tpu.memory_space<vmem>>, %arg6: memref<100x160xf32, #tpu.memory_space<vmem>>, %arg7: memref<100x160xf32, #tpu.memory_space<vmem>>, %arg8: memref<8x190xf32, #tpu.memory_space<vmem>>, %arg9: memref<8x190xf32, #tpu.memory_space<vmem>>, %arg10: memref<72x160xf32, #tpu.memory_space<vmem>>) attributes {dimension_semantics = [#tpu.dimension_semantics<parallel>], iteration_bounds = array<i64: 2>, scalar_prefetch = 0 : i64, scratch_operands = 5 : i64, tpu.core_type = #tpu.core_type<tc>, window_params = [{transform_indices = @transform_0, window_bounds = array<i64: 1, 4, 210>}, {transform_indices = @transform_1, window_bounds = array<i64: 1, 4, 210>}, {pipeline_mode = #tpu.pipeline_mode<synchronous>, transform_indices = @transform_2, window_bounds = array<i64: 8, 100>}, {pipeline_mode = #tpu.pipeline_mode<synchronous>, transform_indices = @transform_3, window_bounds = array<i64: 8, 72>}, {transform_indices = @transform_4, window_bounds = array<i64: 1, 8, 160>}]} {
    %c0 = arith.constant 0 : index
    %c0_0 = arith.constant 0 : index
    %c0_1 = arith.constant 0 : index
    %0 = vector.load %arg1[%c0, %c0_0, %c0_1] : memref<1x4x210xf32, #tpu.memory_space<vmem>>, vector<1x4x160xf32>
    %1 = vector.shape_cast %0 : vector<1x4x160xf32> to vector<4x160xf32>
    %c0_2 = arith.constant 0 : index
    %c0_3 = arith.constant 0 : index
    %2 = vector.load %arg6[%c0_2, %c0_3] : memref<100x160xf32, #tpu.memory_space<vmem>>, vector<4x160xf32>
    tpu.vector_store %arg6[%c0_2, %c0_3], %1 {strides = array<i32>} : memref<100x160xf32, #tpu.memory_space<vmem>>, vector<4x160xf32>,
    %c0_4 = arith.constant 0 : index
    %c0_5 = arith.constant 0 : index
    %c0_6 = arith.constant 0 : index
    %3 = vector.load %arg2[%c0_4, %c0_5, %c0_6] : memref<1x4x210xf32, #tpu.memory_space<vmem>>, vector<1x4x160xf32>
    %4 = vector.shape_cast %3 : vector<1x4x160xf32> to vector<4x160xf32>
    %c0_7 = arith.constant 0 : index
    %c0_8 = arith.constant 0 : index
    %5 = vector.load %arg7[%c0_7, %c0_8] : memref<100x160xf32, #tpu.memory_space<vmem>>, vector<4x160xf32>
    tpu.vector_store %arg7[%c0_7, %c0_8], %4 {strides = array<i32>} : memref<100x160xf32, #tpu.memory_space<vmem>>, vector<4x160xf32>,
    %c0_9 = arith.constant 0 : index
    %c0_10 = arith.constant 0 : index
    %c0_11 = arith.constant 0 : index
    %6 = vector.load %arg2[%c0_9, %c0_10, %c0_11] : memref<1x4x210xf32, #tpu.memory_space<vmem>>, vector<1x4x160xf32>
    %7 = vector.shape_cast %6 : vector<1x4x160xf32> to vector<4x160xf32>
    %c4 = arith.constant 4 : index
    %c0_12 = arith.constant 0 : index
    %8 = vector.load %arg6[%c4, %c0_12] : memref<100x160xf32, #tpu.memory_space<vmem>>, vector<4x160xf32>
    tpu.vector_store %arg6[%c4, %c0_12], %7 {strides = array<i32>} : memref<100x160xf32, #tpu.memory_space<vmem>>, vector<4x160xf32>,
    %c0_13 = arith.constant 0 : index
    %c0_14 = arith.constant 0 : index
    %c1 = arith.constant 1 : index
    %9 = vector.load %arg1[%c0_13, %c0_14, %c1] : memref<1x4x210xf32, #tpu.memory_space<vmem>>, vector<1x4x160xf32>
    %10 = vector.shape_cast %9 : vector<1x4x160xf32> to vector<4x160xf32>
    %c4_15 = arith.constant 4 : index
    %c0_16 = arith.constant 0 : index
    %11 = vector.load %arg7[%c4_15, %c0_16] : memref<100x160xf32, #tpu.memory_space<vmem>>, vector<4x160xf32>
    tpu.vector_store %arg7[%c4_15, %c0_16], %10 {strides = array<i32>} : memref<100x160xf32, #tpu.memory_space<vmem>>, vector<4x160xf32>,
    %c0_17 = arith.constant 0 : index
    %c0_18 = arith.constant 0 : index
    %c1_19 = arith.constant 1 : index
    %12 = vector.load %arg1[%c0_17, %c0_18, %c1_19] : memref<1x4x210xf32, #tpu.memory_space<vmem>>, vector<1x4x160xf32>
    %13 = vector.shape_cast %12 : vector<1x4x160xf32> to vector<4x160xf32>
    %c8 = arith.constant 8 : index
    %c0_20 = arith.constant 0 : index
    %14 = vector.load %arg6[%c8, %c0_20] : memref<100x160xf32, #tpu.memory_space<vmem>>, vector<4x160xf32>
    tpu.vector_store %arg6[%c8, %c0_20], %13 {strides = array<i32>} : memref<100x160xf32, #tpu.memory_space<vmem>>, vector<4x160xf32>,
    %c0_21 = arith.constant 0 : index
    %c0_22 = arith.constant 0 : index
    %c1_23 = arith.constant 1 : index
    %15 = vector.load %arg2[%c0_21, %c0_22, %c1_23] : memref<1x4x210xf32, #tpu.memory_space<vmem>>, vector<1x4x160xf32>
    %16 = vector.shape_cast %15 : vector<1x4x160xf32> to vector<4x160xf32>
    %c8_24 = arith.constant 8 : index
    %c0_25 = arith.constant 0 : index
    %17 = vector.load %arg7[%c8_24, %c0_25] : memref<100x160xf32, #tpu.memory_space<vmem>>, vector<4x160xf32>
    tpu.vector_store %arg7[%c8_24, %c0_25], %16 {strides = array<i32>} : memref<100x160xf32, #tpu.memory_space<vmem>>, vector<4x160xf32>,
    %c0_26 = arith.constant 0 : index
    %c0_27 = arith.constant 0 : index
    %c1_28 = arith.constant 1 : index
    %18 = vector.load %arg2[%c0_26, %c0_27, %c1_28] : memref<1x4x210xf32, #tpu.memory_space<vmem>>, vector<1x4x160xf32>
    %19 = vector.shape_cast %18 : vector<1x4x160xf32> to vector<4x160xf32>
    %c12 = arith.constant 12 : index
    %c0_29 = arith.constant 0 : index
    %20 = vector.load %arg6[%c12, %c0_29] : memref<100x160xf32, #tpu.memory_space<vmem>>, vector<4x160xf32>
    tpu.vector_store %arg6[%c12, %c0_29], %19 {strides = array<i32>} : memref<100x160xf32, #tpu.memory_space<vmem>>, vector<4x160xf32>,
    %c0_30 = arith.constant 0 : index
    %c0_31 = arith.constant 0 : index
    %c2 = arith.constant 2 : index
    %21 = vector.load %arg1[%c0_30, %c0_31, %c2] : memref<1x4x210xf32, #tpu.memory_space<vmem>>, vector<1x4x160xf32>
    %22 = vector.shape_cast %21 : vector<1x4x160xf32> to vector<4x160xf32>
    %c12_32 = arith.constant 12 : index
    %c0_33 = arith.constant 0 : index
    %23 = vector.load %arg7[%c12_32, %c0_33] : memref<100x160xf32, #tpu.memory_space<vmem>>, vector<4x160xf32>
    tpu.vector_store %arg7[%c12_32, %c0_33], %22 {strides = array<i32>} : memref<100x160xf32, #tpu.memory_space<vmem>>, vector<4x160xf32>,
    %c0_34 = arith.constant 0 : index
    %c0_35 = arith.constant 0 : index
    %c2_36 = arith.constant 2 : index
    %24 = vector.load %arg1[%c0_34, %c0_35, %c2_36] : memref<1x4x210xf32, #tpu.memory_space<vmem>>, vector<1x4x160xf32>
    %25 = vector.shape_cast %24 : vector<1x4x160xf32> to vector<4x160xf32>
    %c16 = arith.constant 16 : index
    %c0_37 = arith.constant 0 : index
    %26 = vector.load %arg6[%c16, %c0_37] : memref<100x160xf32, #tpu.memory_space<vmem>>, vector<4x160xf32>
    tpu.vector_store %arg6[%c16, %c0_37], %25 {strides = array<i32>} : memref<100x160xf32, #tpu.memory_space<vmem>>, vector<4x160xf32>,
    %c0_38 = arith.constant 0 : index
    %c0_39 = arith.constant 0 : index
    %c2_40 = arith.constant 2 : index
    %27 = vector.load %arg2[%c0_38, %c0_39, %c2_40] : memref<1x4x210xf32, #tpu.memory_space<vmem>>, vector<1x4x160xf32>
    %28 = vector.shape_cast %27 : vector<1x4x160xf32> to vector<4x160xf32>
    %c16_41 = arith.constant 16 : index
    %c0_42 = arith.constant 0 : index
    %29 = vector.load %arg7[%c16_41, %c0_42] : memref<100x160xf32, #tpu.memory_space<vmem>>, vector<4x160xf32>
    tpu.vector_store %arg7[%c16_41, %c0_42], %28 {strides = array<i32>} : memref<100x160xf32, #tpu.memory_space<vmem>>, vector<4x160xf32>,
    %c0_43 = arith.constant 0 : index
    %c0_44 = arith.constant 0 : index
    %c10 = arith.constant 10 : index
    %30 = vector.load %arg1[%c0_43, %c0_44, %c10] : memref<1x4x210xf32, #tpu.memory_space<vmem>>, vector<1x4x160xf32>
    %31 = vector.shape_cast %30 : vector<1x4x160xf32> to vector<4x160xf32>
    %c20 = arith.constant 20 : index
    %c0_45 = arith.constant 0 : index
    %32 = vector.load %arg6[%c20, %c0_45] : memref<100x160xf32, #tpu.memory_space<vmem>>, vector<4x160xf32>
    tpu.vector_store %arg6[%c20, %c0_45], %31 {strides = array<i32>} : memref<100x160xf32, #tpu.memory_space<vmem>>, vector<4x160xf32>,
    %c0_46 = arith.constant 0 : index
    %c0_47 = arith.constant 0 : index
    %c10_48 = arith.constant 10 : index
    %33 = vector.load %arg2[%c0_46, %c0_47, %c10_48] : memref<1x4x210xf32, #tpu.memory_space<vmem>>, vector<1x4x160xf32>
    %34 = vector.shape_cast %33 : vector<1x4x160xf32> to vector<4x160xf32>
    %c20_49 = arith.constant 20 : index
    %c0_50 = arith.constant 0 : index
    %35 = vector.load %arg7[%c20_49, %c0_50] : memref<100x160xf32, #tpu.memory_space<vmem>>, vector<4x160xf32>
    tpu.vector_store %arg7[%c20_49, %c0_50], %34 {strides = array<i32>} : memref<100x160xf32, #tpu.memory_space<vmem>>, vector<4x160xf32>,
    %c0_51 = arith.constant 0 : index
    %c0_52 = arith.constant 0 : index
    %c10_53 = arith.constant 10 : index
    %36 = vector.load %arg2[%c0_51, %c0_52, %c10_53] : memref<1x4x210xf32, #tpu.memory_space<vmem>>, vector<1x4x160xf32>
    %37 = vector.shape_cast %36 : vector<1x4x160xf32> to vector<4x160xf32>
    %c24 = arith.constant 24 : index
    %c0_54 = arith.constant 0 : index
    %38 = vector.load %arg6[%c24, %c0_54] : memref<100x160xf32, #tpu.memory_space<vmem>>, vector<4x160xf32>
    tpu.vector_store %arg6[%c24, %c0_54], %37 {strides = array<i32>} : memref<100x160xf32, #tpu.memory_space<vmem>>, vector<4x160xf32>,
    %c0_55 = arith.constant 0 : index
    %c0_56 = arith.constant 0 : index
    %c11 = arith.constant 11 : index
    %39 = vector.load %arg1[%c0_55, %c0_56, %c11] : memref<1x4x210xf32, #tpu.memory_space<vmem>>, vector<1x4x160xf32>
    %40 = vector.shape_cast %39 : vector<1x4x160xf32> to vector<4x160xf32>
    %c24_57 = arith.constant 24 : index
    %c0_58 = arith.constant 0 : index
    %41 = vector.load %arg7[%c24_57, %c0_58] : memref<100x160xf32, #tpu.memory_space<vmem>>, vector<4x160xf32>
    tpu.vector_store %arg7[%c24_57, %c0_58], %40 {strides = array<i32>} : memref<100x160xf32, #tpu.memory_space<vmem>>, vector<4x160xf32>,
    %c0_59 = arith.constant 0 : index
    %c0_60 = arith.constant 0 : index
    %c11_61 = arith.constant 11 : index
    %42 = vector.load %arg1[%c0_59, %c0_60, %c11_61] : memref<1x4x210xf32, #tpu.memory_space<vmem>>, vector<1x4x160xf32>
    %43 = vector.shape_cast %42 : vector<1x4x160xf32> to vector<4x160xf32>
    %c28 = arith.constant 28 : index
    %c0_62 = arith.constant 0 : index
    %44 = vector.load %arg6[%c28, %c0_62] : memref<100x160xf32, #tpu.memory_space<vmem>>, vector<4x160xf32>
    tpu.vector_store %arg6[%c28, %c0_62], %43 {strides = array<i32>} : memref<100x160xf32, #tpu.memory_space<vmem>>, vector<4x160xf32>,
    %c0_63 = arith.constant 0 : index
    %c0_64 = arith.constant 0 : index
    %c11_65 = arith.constant 11 : index
    %45 = vector.load %arg2[%c0_63, %c0_64, %c11_65] : memref<1x4x210xf32, #tpu.memory_space<vmem>>, vector<1x4x160xf32>
    %46 = vector.shape_cast %45 : vector<1x4x160xf32> to vector<4x160xf32>
    %c28_66 = arith.constant 28 : index
    %c0_67 = arith.constant 0 : index
    %47 = vector.load %arg7[%c28_66, %c0_67] : memref<100x160xf32, #tpu.memory_space<vmem>>, vector<4x160xf32>
    tpu.vector_store %arg7[%c28_66, %c0_67], %46 {strides = array<i32>} : memref<100x160xf32, #tpu.memory_space<vmem>>, vector<4x160xf32>,
    %c0_68 = arith.constant 0 : index
    %c0_69 = arith.constant 0 : index
    %c11_70 = arith.constant 11 : index
    %48 = vector.load %arg2[%c0_68, %c0_69, %c11_70] : memref<1x4x210xf32, #tpu.memory_space<vmem>>, vector<1x4x160xf32>
    %49 = vector.shape_cast %48 : vector<1x4x160xf32> to vector<4x160xf32>
    %c32 = arith.constant 32 : index
    %c0_71 = arith.constant 0 : index
    %50 = vector.load %arg6[%c32, %c0_71] : memref<100x160xf32, #tpu.memory_space<vmem>>, vector<4x160xf32>
    tpu.vector_store %arg6[%c32, %c0_71], %49 {strides = array<i32>} : memref<100x160xf32, #tpu.memory_space<vmem>>, vector<4x160xf32>,
    %c0_72 = arith.constant 0 : index
    %c0_73 = arith.constant 0 : index
    %c12_74 = arith.constant 12 : index
    %51 = vector.load %arg1[%c0_72, %c0_73, %c12_74] : memref<1x4x210xf32, #tpu.memory_space<vmem>>, vector<1x4x160xf32>
    %52 = vector.shape_cast %51 : vector<1x4x160xf32> to vector<4x160xf32>
    %c32_75 = arith.constant 32 : index
    %c0_76 = arith.constant 0 : index
    %53 = vector.load %arg7[%c32_75, %c0_76] : memref<100x160xf32, #tpu.memory_space<vmem>>, vector<4x160xf32>
    tpu.vector_store %arg7[%c32_75, %c0_76], %52 {strides = array<i32>} : memref<100x160xf32, #tpu.memory_space<vmem>>, vector<4x160xf32>,
    %c0_77 = arith.constant 0 : index
    %c0_78 = arith.constant 0 : index
    %c12_79 = arith.constant 12 : index
    %54 = vector.load %arg1[%c0_77, %c0_78, %c12_79] : memref<1x4x210xf32, #tpu.memory_space<vmem>>, vector<1x4x160xf32>
    %55 = vector.shape_cast %54 : vector<1x4x160xf32> to vector<4x160xf32>
    %c36 = arith.constant 36 : index
    %c0_80 = arith.constant 0 : index
    %56 = vector.load %arg6[%c36, %c0_80] : memref<100x160xf32, #tpu.memory_space<vmem>>, vector<4x160xf32>
    tpu.vector_store %arg6[%c36, %c0_80], %55 {strides = array<i32>} : memref<100x160xf32, #tpu.memory_space<vmem>>, vector<4x160xf32>,
    %c0_81 = arith.constant 0 : index
    %c0_82 = arith.constant 0 : index
    %c12_83 = arith.constant 12 : index
    %57 = vector.load %arg2[%c0_81, %c0_82, %c12_83] : memref<1x4x210xf32, #tpu.memory_space<vmem>>, vector<1x4x160xf32>
    %58 = vector.shape_cast %57 : vector<1x4x160xf32> to vector<4x160xf32>
    %c36_84 = arith.constant 36 : index
    %c0_85 = arith.constant 0 : index
    %59 = vector.load %arg7[%c36_84, %c0_85] : memref<100x160xf32, #tpu.memory_space<vmem>>, vector<4x160xf32>
    tpu.vector_store %arg7[%c36_84, %c0_85], %58 {strides = array<i32>} : memref<100x160xf32, #tpu.memory_space<vmem>>, vector<4x160xf32>,
    %c0_86 = arith.constant 0 : index
    %c0_87 = arith.constant 0 : index
    %c20_88 = arith.constant 20 : index
    %60 = vector.load %arg1[%c0_86, %c0_87, %c20_88] : memref<1x4x210xf32, #tpu.memory_space<vmem>>, vector<1x4x160xf32>
    %61 = vector.shape_cast %60 : vector<1x4x160xf32> to vector<4x160xf32>
    %c40 = arith.constant 40 : index
    %c0_89 = arith.constant 0 : index
    %62 = vector.load %arg6[%c40, %c0_89] : memref<100x160xf32, #tpu.memory_space<vmem>>, vector<4x160xf32>
    tpu.vector_store %arg6[%c40, %c0_89], %61 {strides = array<i32>} : memref<100x160xf32, #tpu.memory_space<vmem>>, vector<4x160xf32>,
    %c0_90 = arith.constant 0 : index
    %c0_91 = arith.constant 0 : index
    %c20_92 = arith.constant 20 : index
    %63 = vector.load %arg2[%c0_90, %c0_91, %c20_92] : memref<1x4x210xf32, #tpu.memory_space<vmem>>, vector<1x4x160xf32>
    %64 = vector.shape_cast %63 : vector<1x4x160xf32> to vector<4x160xf32>
    %c40_93 = arith.constant 40 : index
    %c0_94 = arith.constant 0 : index
    %65 = vector.load %arg7[%c40_93, %c0_94] : memref<100x160xf32, #tpu.memory_space<vmem>>, vector<4x160xf32>
    tpu.vector_store %arg7[%c40_93, %c0_94], %64 {strides = array<i32>} : memref<100x160xf32, #tpu.memory_space<vmem>>, vector<4x160xf32>,
    %c0_95 = arith.constant 0 : index
    %c0_96 = arith.constant 0 : index
    %c20_97 = arith.constant 20 : index
    %66 = vector.load %arg2[%c0_95, %c0_96, %c20_97] : memref<1x4x210xf32, #tpu.memory_space<vmem>>, vector<1x4x160xf32>
    %67 = vector.shape_cast %66 : vector<1x4x160xf32> to vector<4x160xf32>
    %c44 = arith.constant 44 : index
    %c0_98 = arith.constant 0 : index
    %68 = vector.load %arg6[%c44, %c0_98] : memref<100x160xf32, #tpu.memory_space<vmem>>, vector<4x160xf32>
    tpu.vector_store %arg6[%c44, %c0_98], %67 {strides = array<i32>} : memref<100x160xf32, #tpu.memory_space<vmem>>, vector<4x160xf32>,
    %c0_99 = arith.constant 0 : index
    %c0_100 = arith.constant 0 : index
    %c21 = arith.constant 21 : index
    %69 = vector.load %arg1[%c0_99, %c0_100, %c21] : memref<1x4x210xf32, #tpu.memory_space<vmem>>, vector<1x4x160xf32>
    %70 = vector.shape_cast %69 : vector<1x4x160xf32> to vector<4x160xf32>
    %c44_101 = arith.constant 44 : index
    %c0_102 = arith.constant 0 : index
    %71 = vector.load %arg7[%c44_101, %c0_102] : memref<100x160xf32, #tpu.memory_space<vmem>>, vector<4x160xf32>
    tpu.vector_store %arg7[%c44_101, %c0_102], %70 {strides = array<i32>} : memref<100x160xf32, #tpu.memory_space<vmem>>, vector<4x160xf32>,
    %c0_103 = arith.constant 0 : index
    %c0_104 = arith.constant 0 : index
    %c21_105 = arith.constant 21 : index
    %72 = vector.load %arg1[%c0_103, %c0_104, %c21_105] : memref<1x4x210xf32, #tpu.memory_space<vmem>>, vector<1x4x160xf32>
    %73 = vector.shape_cast %72 : vector<1x4x160xf32> to vector<4x160xf32>
    %c48 = arith.constant 48 : index
    %c0_106 = arith.constant 0 : index
    %74 = vector.load %arg6[%c48, %c0_106] : memref<100x160xf32, #tpu.memory_space<vmem>>, vector<4x160xf32>
    tpu.vector_store %arg6[%c48, %c0_106], %73 {strides = array<i32>} : memref<100x160xf32, #tpu.memory_space<vmem>>, vector<4x160xf32>,
    %c0_107 = arith.constant 0 : index
    %c0_108 = arith.constant 0 : index
    %c21_109 = arith.constant 21 : index
    %75 = vector.load %arg2[%c0_107, %c0_108, %c21_109] : memref<1x4x210xf32, #tpu.memory_space<vmem>>, vector<1x4x160xf32>
    %76 = vector.shape_cast %75 : vector<1x4x160xf32> to vector<4x160xf32>
    %c48_110 = arith.constant 48 : index
    %c0_111 = arith.constant 0 : index
    %77 = vector.load %arg7[%c48_110, %c0_111] : memref<100x160xf32, #tpu.memory_space<vmem>>, vector<4x160xf32>
    tpu.vector_store %arg7[%c48_110, %c0_111], %76 {strides = array<i32>} : memref<100x160xf32, #tpu.memory_space<vmem>>, vector<4x160xf32>,
    %c0_112 = arith.constant 0 : index
    %c0_113 = arith.constant 0 : index
    %c21_114 = arith.constant 21 : index
    %78 = vector.load %arg2[%c0_112, %c0_113, %c21_114] : memref<1x4x210xf32, #tpu.memory_space<vmem>>, vector<1x4x160xf32>
    %79 = vector.shape_cast %78 : vector<1x4x160xf32> to vector<4x160xf32>
    %c52 = arith.constant 52 : index
    %c0_115 = arith.constant 0 : index
    %80 = vector.load %arg6[%c52, %c0_115] : memref<100x160xf32, #tpu.memory_space<vmem>>, vector<4x160xf32>
    tpu.vector_store %arg6[%c52, %c0_115], %79 {strides = array<i32>} : memref<100x160xf32, #tpu.memory_space<vmem>>, vector<4x160xf32>,
    %c0_116 = arith.constant 0 : index
    %c0_117 = arith.constant 0 : index
    %c22 = arith.constant 22 : index
    %81 = vector.load %arg1[%c0_116, %c0_117, %c22] : memref<1x4x210xf32, #tpu.memory_space<vmem>>, vector<1x4x160xf32>
    %82 = vector.shape_cast %81 : vector<1x4x160xf32> to vector<4x160xf32>
    %c52_118 = arith.constant 52 : index
    %c0_119 = arith.constant 0 : index
    %83 = vector.load %arg7[%c52_118, %c0_119] : memref<100x160xf32, #tpu.memory_space<vmem>>, vector<4x160xf32>
    tpu.vector_store %arg7[%c52_118, %c0_119], %82 {strides = array<i32>} : memref<100x160xf32, #tpu.memory_space<vmem>>, vector<4x160xf32>,
    %c0_120 = arith.constant 0 : index
    %c0_121 = arith.constant 0 : index
    %c22_122 = arith.constant 22 : index
    %84 = vector.load %arg1[%c0_120, %c0_121, %c22_122] : memref<1x4x210xf32, #tpu.memory_space<vmem>>, vector<1x4x160xf32>
    %85 = vector.shape_cast %84 : vector<1x4x160xf32> to vector<4x160xf32>
    %c56 = arith.constant 56 : index
    %c0_123 = arith.constant 0 : index
    %86 = vector.load %arg6[%c56, %c0_123] : memref<100x160xf32, #tpu.memory_space<vmem>>, vector<4x160xf32>
    tpu.vector_store %arg6[%c56, %c0_123], %85 {strides = array<i32>} : memref<100x160xf32, #tpu.memory_space<vmem>>, vector<4x160xf32>,
    %c0_124 = arith.constant 0 : index
    %c0_125 = arith.constant 0 : index
    %c22_126 = arith.constant 22 : index
    %87 = vector.load %arg2[%c0_124, %c0_125, %c22_126] : memref<1x4x210xf32, #tpu.memory_space<vmem>>, vector<1x4x160xf32>
    %88 = vector.shape_cast %87 : vector<1x4x160xf32> to vector<4x160xf32>
    %c56_127 = arith.constant 56 : index
    %c0_128 = arith.constant 0 : index
    %89 = vector.load %arg7[%c56_127, %c0_128] : memref<100x160xf32, #tpu.memory_space<vmem>>, vector<4x160xf32>
    tpu.vector_store %arg7[%c56_127, %c0_128], %88 {strides = array<i32>} : memref<100x160xf32, #tpu.memory_space<vmem>>, vector<4x160xf32>,
    %c0_129 = arith.constant 0 : index
    %c0_130 = arith.constant 0 : index
    %c30 = arith.constant 30 : index
    %90 = vector.load %arg1[%c0_129, %c0_130, %c30] : memref<1x4x210xf32, #tpu.memory_space<vmem>>, vector<1x4x160xf32>
    %91 = vector.shape_cast %90 : vector<1x4x160xf32> to vector<4x160xf32>
    %c60 = arith.constant 60 : index
    %c0_131 = arith.constant 0 : index
    %92 = vector.load %arg6[%c60, %c0_131] : memref<100x160xf32, #tpu.memory_space<vmem>>, vector<4x160xf32>
    tpu.vector_store %arg6[%c60, %c0_131], %91 {strides = array<i32>} : memref<100x160xf32, #tpu.memory_space<vmem>>, vector<4x160xf32>,
    %c0_132 = arith.constant 0 : index
    %c0_133 = arith.constant 0 : index
    %c30_134 = arith.constant 30 : index
    %93 = vector.load %arg2[%c0_132, %c0_133, %c30_134] : memref<1x4x210xf32, #tpu.memory_space<vmem>>, vector<1x4x160xf32>
    %94 = vector.shape_cast %93 : vector<1x4x160xf32> to vector<4x160xf32>
    %c60_135 = arith.constant 60 : index
    %c0_136 = arith.constant 0 : index
    %95 = vector.load %arg7[%c60_135, %c0_136] : memref<100x160xf32, #tpu.memory_space<vmem>>, vector<4x160xf32>
    tpu.vector_store %arg7[%c60_135, %c0_136], %94 {strides = array<i32>} : memref<100x160xf32, #tpu.memory_space<vmem>>, vector<4x160xf32>,
    %c0_137 = arith.constant 0 : index
    %c0_138 = arith.constant 0 : index
    %c30_139 = arith.constant 30 : index
    %96 = vector.load %arg2[%c0_137, %c0_138, %c30_139] : memref<1x4x210xf32, #tpu.memory_space<vmem>>, vector<1x4x160xf32>
    %97 = vector.shape_cast %96 : vector<1x4x160xf32> to vector<4x160xf32>
    %c64 = arith.constant 64 : index
    %c0_140 = arith.constant 0 : index
    %98 = vector.load %arg6[%c64, %c0_140] : memref<100x160xf32, #tpu.memory_space<vmem>>, vector<4x160xf32>
    tpu.vector_store %arg6[%c64, %c0_140], %97 {strides = array<i32>} : memref<100x160xf32, #tpu.memory_space<vmem>>, vector<4x160xf32>,
    %c0_141 = arith.constant 0 : index
    %c0_142 = arith.constant 0 : index
    %c31 = arith.constant 31 : index
    %99 = vector.load %arg1[%c0_141, %c0_142, %c31] : memref<1x4x210xf32, #tpu.memory_space<vmem>>, vector<1x4x160xf32>
    %100 = vector.shape_cast %99 : vector<1x4x160xf32> to vector<4x160xf32>
    %c64_143 = arith.constant 64 : index
    %c0_144 = arith.constant 0 : index
    %101 = vector.load %arg7[%c64_143, %c0_144] : memref<100x160xf32, #tpu.memory_space<vmem>>, vector<4x160xf32>
    tpu.vector_store %arg7[%c64_143, %c0_144], %100 {strides = array<i32>} : memref<100x160xf32, #tpu.memory_space<vmem>>, vector<4x160xf32>,
    %c0_145 = arith.constant 0 : index
    %c0_146 = arith.constant 0 : index
    %c31_147 = arith.constant 31 : index
    %102 = vector.load %arg1[%c0_145, %c0_146, %c31_147] : memref<1x4x210xf32, #tpu.memory_space<vmem>>, vector<1x4x160xf32>
    %103 = vector.shape_cast %102 : vector<1x4x160xf32> to vector<4x160xf32>
    %c68 = arith.constant 68 : index
    %c0_148 = arith.constant 0 : index
    %104 = vector.load %arg6[%c68, %c0_148] : memref<100x160xf32, #tpu.memory_space<vmem>>, vector<4x160xf32>
    tpu.vector_store %arg6[%c68, %c0_148], %103 {strides = array<i32>} : memref<100x160xf32, #tpu.memory_space<vmem>>, vector<4x160xf32>,
    %c0_149 = arith.constant 0 : index
    %c0_150 = arith.constant 0 : index
    %c31_151 = arith.constant 31 : index
    %105 = vector.load %arg2[%c0_149, %c0_150, %c31_151] : memref<1x4x210xf32, #tpu.memory_space<vmem>>, vector<1x4x160xf32>
    %106 = vector.shape_cast %105 : vector<1x4x160xf32> to vector<4x160xf32>
    %c68_152 = arith.constant 68 : index
    %c0_153 = arith.constant 0 : index
    %107 = vector.load %arg7[%c68_152, %c0_153] : memref<100x160xf32, #tpu.memory_space<vmem>>, vector<4x160xf32>
    tpu.vector_store %arg7[%c68_152, %c0_153], %106 {strides = array<i32>} : memref<100x160xf32, #tpu.memory_space<vmem>>, vector<4x160xf32>,
    %c0_154 = arith.constant 0 : index
    %c0_155 = arith.constant 0 : index
    %c31_156 = arith.constant 31 : index
    %108 = vector.load %arg2[%c0_154, %c0_155, %c31_156] : memref<1x4x210xf32, #tpu.memory_space<vmem>>, vector<1x4x160xf32>
    %109 = vector.shape_cast %108 : vector<1x4x160xf32> to vector<4x160xf32>
    %c72 = arith.constant 72 : index
    %c0_157 = arith.constant 0 : index
    %110 = vector.load %arg6[%c72, %c0_157] : memref<100x160xf32, #tpu.memory_space<vmem>>, vector<4x160xf32>
    tpu.vector_store %arg6[%c72, %c0_157], %109 {strides = array<i32>} : memref<100x160xf32, #tpu.memory_space<vmem>>, vector<4x160xf32>,
    %c0_158 = arith.constant 0 : index
    %c0_159 = arith.constant 0 : index
    %c32_160 = arith.constant 32 : index
    %111 = vector.load %arg1[%c0_158, %c0_159, %c32_160] : memref<1x4x210xf32, #tpu.memory_space<vmem>>, vector<1x4x160xf32>
    %112 = vector.shape_cast %111 : vector<1x4x160xf32> to vector<4x160xf32>
    %c72_161 = arith.constant 72 : index
    %c0_162 = arith.constant 0 : index
    %113 = vector.load %arg7[%c72_161, %c0_162] : memref<100x160xf32, #tpu.memory_space<vmem>>, vector<4x160xf32>
    tpu.vector_store %arg7[%c72_161, %c0_162], %112 {strides = array<i32>} : memref<100x160xf32, #tpu.memory_space<vmem>>, vector<4x160xf32>,
    %c0_163 = arith.constant 0 : index
    %c0_164 = arith.constant 0 : index
    %c32_165 = arith.constant 32 : index
    %114 = vector.load %arg1[%c0_163, %c0_164, %c32_165] : memref<1x4x210xf32, #tpu.memory_space<vmem>>, vector<1x4x160xf32>
    %115 = vector.shape_cast %114 : vector<1x4x160xf32> to vector<4x160xf32>
    %c76 = arith.constant 76 : index
    %c0_166 = arith.constant 0 : index
    %116 = vector.load %arg6[%c76, %c0_166] : memref<100x160xf32, #tpu.memory_space<vmem>>, vector<4x160xf32>
    tpu.vector_store %arg6[%c76, %c0_166], %115 {strides = array<i32>} : memref<100x160xf32, #tpu.memory_space<vmem>>, vector<4x160xf32>,
    %c0_167 = arith.constant 0 : index
    %c0_168 = arith.constant 0 : index
    %c32_169 = arith.constant 32 : index
    %117 = vector.load %arg2[%c0_167, %c0_168, %c32_169] : memref<1x4x210xf32, #tpu.memory_space<vmem>>, vector<1x4x160xf32>
    %118 = vector.shape_cast %117 : vector<1x4x160xf32> to vector<4x160xf32>
    %c76_170 = arith.constant 76 : index
    %c0_171 = arith.constant 0 : index
    %119 = vector.load %arg7[%c76_170, %c0_171] : memref<100x160xf32, #tpu.memory_space<vmem>>, vector<4x160xf32>
    tpu.vector_store %arg7[%c76_170, %c0_171], %118 {strides = array<i32>} : memref<100x160xf32, #tpu.memory_space<vmem>>, vector<4x160xf32>,
    %c0_172 = arith.constant 0 : index
    %c0_173 = arith.constant 0 : index
    %c40_174 = arith.constant 40 : index
    %120 = vector.load %arg1[%c0_172, %c0_173, %c40_174] : memref<1x4x210xf32, #tpu.memory_space<vmem>>, vector<1x4x160xf32>
    %121 = vector.shape_cast %120 : vector<1x4x160xf32> to vector<4x160xf32>
    %c80 = arith.constant 80 : index
    %c0_175 = arith.constant 0 : index
    %122 = vector.load %arg6[%c80, %c0_175] : memref<100x160xf32, #tpu.memory_space<vmem>>, vector<4x160xf32>
    tpu.vector_store %arg6[%c80, %c0_175], %121 {strides = array<i32>} : memref<100x160xf32, #tpu.memory_space<vmem>>, vector<4x160xf32>,
    %c0_176 = arith.constant 0 : index
    %c0_177 = arith.constant 0 : index
    %c40_178 = arith.constant 40 : index
    %123 = vector.load %arg2[%c0_176, %c0_177, %c40_178] : memref<1x4x210xf32, #tpu.memory_space<vmem>>, vector<1x4x160xf32>
    %124 = vector.shape_cast %123 : vector<1x4x160xf32> to vector<4x160xf32>
    %c80_179 = arith.constant 80 : index
    %c0_180 = arith.constant 0 : index
    %125 = vector.load %arg7[%c80_179, %c0_180] : memref<100x160xf32, #tpu.memory_space<vmem>>, vector<4x160xf32>
    tpu.vector_store %arg7[%c80_179, %c0_180], %124 {strides = array<i32>} : memref<100x160xf32, #tpu.memory_space<vmem>>, vector<4x160xf32>,
    %c0_181 = arith.constant 0 : index
    %c0_182 = arith.constant 0 : index
    %c40_183 = arith.constant 40 : index
    %126 = vector.load %arg2[%c0_181, %c0_182, %c40_183] : memref<1x4x210xf32, #tpu.memory_space<vmem>>, vector<1x4x160xf32>
    %127 = vector.shape_cast %126 : vector<1x4x160xf32> to vector<4x160xf32>
    %c84 = arith.constant 84 : index
    %c0_184 = arith.constant 0 : index
    %128 = vector.load %arg6[%c84, %c0_184] : memref<100x160xf32, #tpu.memory_space<vmem>>, vector<4x160xf32>
    tpu.vector_store %arg6[%c84, %c0_184], %127 {strides = array<i32>} : memref<100x160xf32, #tpu.memory_space<vmem>>, vector<4x160xf32>,
    %c0_185 = arith.constant 0 : index
    %c0_186 = arith.constant 0 : index
    %c41 = arith.constant 41 : index
    %129 = vector.load %arg1[%c0_185, %c0_186, %c41] : memref<1x4x210xf32, #tpu.memory_space<vmem>>, vector<1x4x160xf32>
    %130 = vector.shape_cast %129 : vector<1x4x160xf32> to vector<4x160xf32>
    %c84_187 = arith.constant 84 : index
    %c0_188 = arith.constant 0 : index
    %131 = vector.load %arg7[%c84_187, %c0_188] : memref<100x160xf32, #tpu.memory_space<vmem>>, vector<4x160xf32>
    tpu.vector_store %arg7[%c84_187, %c0_188], %130 {strides = array<i32>} : memref<100x160xf32, #tpu.memory_space<vmem>>, vector<4x160xf32>,
    %c0_189 = arith.constant 0 : index
    %c0_190 = arith.constant 0 : index
    %c41_191 = arith.constant 41 : index
    %132 = vector.load %arg1[%c0_189, %c0_190, %c41_191] : memref<1x4x210xf32, #tpu.memory_space<vmem>>, vector<1x4x160xf32>
    %133 = vector.shape_cast %132 : vector<1x4x160xf32> to vector<4x160xf32>
    %c88 = arith.constant 88 : index
    %c0_192 = arith.constant 0 : index
    %134 = vector.load %arg6[%c88, %c0_192] : memref<100x160xf32, #tpu.memory_space<vmem>>, vector<4x160xf32>
    tpu.vector_store %arg6[%c88, %c0_192], %133 {strides = array<i32>} : memref<100x160xf32, #tpu.memory_space<vmem>>, vector<4x160xf32>,
    %c0_193 = arith.constant 0 : index
    %c0_194 = arith.constant 0 : index
    %c41_195 = arith.constant 41 : index
    %135 = vector.load %arg2[%c0_193, %c0_194, %c41_195] : memref<1x4x210xf32, #tpu.memory_space<vmem>>, vector<1x4x160xf32>
    %136 = vector.shape_cast %135 : vector<1x4x160xf32> to vector<4x160xf32>
    %c88_196 = arith.constant 88 : index
    %c0_197 = arith.constant 0 : index
    %137 = vector.load %arg7[%c88_196, %c0_197] : memref<100x160xf32, #tpu.memory_space<vmem>>, vector<4x160xf32>
    tpu.vector_store %arg7[%c88_196, %c0_197], %136 {strides = array<i32>} : memref<100x160xf32, #tpu.memory_space<vmem>>, vector<4x160xf32>,
    %c0_198 = arith.constant 0 : index
    %c0_199 = arith.constant 0 : index
    %c41_200 = arith.constant 41 : index
    %138 = vector.load %arg2[%c0_198, %c0_199, %c41_200] : memref<1x4x210xf32, #tpu.memory_space<vmem>>, vector<1x4x160xf32>
    %139 = vector.shape_cast %138 : vector<1x4x160xf32> to vector<4x160xf32>
    %c92 = arith.constant 92 : index
    %c0_201 = arith.constant 0 : index
    %140 = vector.load %arg6[%c92, %c0_201] : memref<100x160xf32, #tpu.memory_space<vmem>>, vector<4x160xf32>
    tpu.vector_store %arg6[%c92, %c0_201], %139 {strides = array<i32>} : memref<100x160xf32, #tpu.memory_space<vmem>>, vector<4x160xf32>,
    %c0_202 = arith.constant 0 : index
    %c0_203 = arith.constant 0 : index
    %c42 = arith.constant 42 : index
    %141 = vector.load %arg1[%c0_202, %c0_203, %c42] : memref<1x4x210xf32, #tpu.memory_space<vmem>>, vector<1x4x160xf32>
    %142 = vector.shape_cast %141 : vector<1x4x160xf32> to vector<4x160xf32>
    %c92_204 = arith.constant 92 : index
    %c0_205 = arith.constant 0 : index
    %143 = vector.load %arg7[%c92_204, %c0_205] : memref<100x160xf32, #tpu.memory_space<vmem>>, vector<4x160xf32>
    tpu.vector_store %arg7[%c92_204, %c0_205], %142 {strides = array<i32>} : memref<100x160xf32, #tpu.memory_space<vmem>>, vector<4x160xf32>,
    %c0_206 = arith.constant 0 : index
    %c0_207 = arith.constant 0 : index
    %c42_208 = arith.constant 42 : index
    %144 = vector.load %arg1[%c0_206, %c0_207, %c42_208] : memref<1x4x210xf32, #tpu.memory_space<vmem>>, vector<1x4x160xf32>
    %145 = vector.shape_cast %144 : vector<1x4x160xf32> to vector<4x160xf32>
    %c96 = arith.constant 96 : index
    %c0_209 = arith.constant 0 : index
    %146 = vector.load %arg6[%c96, %c0_209] : memref<100x160xf32, #tpu.memory_space<vmem>>, vector<4x160xf32>
    tpu.vector_store %arg6[%c96, %c0_209], %145 {strides = array<i32>} : memref<100x160xf32, #tpu.memory_space<vmem>>, vector<4x160xf32>,
    %c0_210 = arith.constant 0 : index
    %c0_211 = arith.constant 0 : index
    %c42_212 = arith.constant 42 : index
    %147 = vector.load %arg2[%c0_210, %c0_211, %c42_212] : memref<1x4x210xf32, #tpu.memory_space<vmem>>, vector<1x4x160xf32>
    %148 = vector.shape_cast %147 : vector<1x4x160xf32> to vector<4x160xf32>
    %c96_213 = arith.constant 96 : index
    %c0_214 = arith.constant 0 : index
    %149 = vector.load %arg7[%c96_213, %c0_214] : memref<100x160xf32, #tpu.memory_space<vmem>>, vector<4x160xf32>
    tpu.vector_store %arg7[%c96_213, %c0_214], %148 {strides = array<i32>} : memref<100x160xf32, #tpu.memory_space<vmem>>, vector<4x160xf32>,
    %c0_215 = arith.constant 0 : index
    %c0_216 = arith.constant 0 : index
    %150 = vector.load %arg3[%c0_215, %c0_216] : memref<8x100xf32, #tpu.memory_space<vmem>>, vector<8x100xf32>
    %c0_217 = arith.constant 0 : index
    %c0_218 = arith.constant 0 : index
    %151 = vector.load %arg6[%c0_217, %c0_218] : memref<100x160xf32, #tpu.memory_space<vmem>>, vector<100x160xf32>
    %cst = arith.constant dense<0.000000e+00> : vector<8x160xf32>
    %152 = tpu.matmul %150, %151, %cst {dimension_numbers = #tpu.dot_dimension_numbers<[1], [0], [0], [1], [0, 0, 1, 1], [], []>} : vector<8x100xf32>, vector<100x160xf32>, vector<8x160xf32> -> vector<8x160xf32>
    %c0_219 = arith.constant 0 : index
    %c0_220 = arith.constant 0 : index
    %153 = vector.load %arg7[%c0_219, %c0_220] : memref<100x160xf32, #tpu.memory_space<vmem>>, vector<100x160xf32>
    %cst_221 = arith.constant dense<0.000000e+00> : vector<8x160xf32>
    %154 = tpu.matmul %150, %153, %cst_221 {dimension_numbers = #tpu.dot_dimension_numbers<[1], [0], [0], [1], [0, 0, 1, 1], [], []>} : vector<8x100xf32>, vector<100x160xf32>, vector<8x160xf32> -> vector<8x160xf32>
    %155 = tpu.iota {dimensions = array<i32: 1>} : vector<1x160xi32>
    %c10_i32 = arith.constant 10 : i32
    %c0_i32 = arith.constant 0 : i32
    %156 = arith.cmpi eq, %c10_i32, %c0_i32 : i32
    %c1_i32 = arith.constant 1 : i32
    %157 = arith.select %156, %c1_i32, %c10_i32 : i32
    %158 = vector.broadcast %157 : i32 to vector<1x160xi32>
    %159 = arith.remsi %155, %158 : vector<1x160xi32>
    %c0_i32_222 = arith.constant 0 : i32
    %160 = vector.broadcast %c0_i32_222 : i32 to vector<1x160xi32>
    %161 = arith.cmpi ne, %159, %160 : vector<1x160xi32>
    %c0_i32_223 = arith.constant 0 : i32
    %162 = vector.broadcast %c0_i32_223 : i32 to vector<1x160xi32>
    %163 = arith.cmpi slt, %159, %162 : vector<1x160xi32>
    %c0_i32_224 = arith.constant 0 : i32
    %164 = arith.cmpi slt, %157, %c0_i32_224 : i32
    %165 = vector.broadcast %164 : i1 to vector<1x160xi1>
    %166 = vector.broadcast %165 : vector<1x160xi1> to vector<1x160xi1>
    %167 = arith.xori %163, %166 : vector<1x160xi1>
    %168 = arith.andi %167, %161 : vector<1x160xi1>
    %169 = vector.broadcast %157 : i32 to vector<1x160xi32>
    %170 = arith.addi %159, %169 : vector<1x160xi32>
    %171 = arith.select %168, %170, %159 : vector<1x160xi1>, vector<1x160xi32>
    %c8_i32 = arith.constant 8 : i32
    %172 = vector.broadcast %c8_i32 : i32 to vector<1x160xi32>
    %173 = arith.cmpi slt, %171, %172 : vector<1x160xi32>
    %cst_225 = arith.constant 0.000000e+00 : f32
    %174 = vector.shape_cast %173 : vector<1x160xi1> to vector<1x160xi1>
    %175 = vector.broadcast %174 : vector<1x160xi1> to vector<8x160xi1>
    %176 = vector.broadcast %cst_225 : f32 to vector<8x160xf32>
    %177 = arith.select %175, %152, %176 : vector<8x160xi1>, vector<8x160xf32>
    %cst_226 = arith.constant dense<0.000000e+00> : vector<8xf32>
    %178 = vector.multi_reduction <add>, %177, %cst_226 [1] : vector<8x160xf32> to vector<8xf32>
    %179 = vector.shape_cast %178 : vector<8xf32> to vector<8x1xf32>
    %cst_227 = arith.constant 0.000000e+00 : f32
    %180 = vector.shape_cast %173 : vector<1x160xi1> to vector<1x160xi1>
    %181 = vector.broadcast %180 : vector<1x160xi1> to vector<8x160xi1>
    %182 = vector.broadcast %cst_227 : f32 to vector<8x160xf32>
    %183 = arith.select %181, %154, %182 : vector<8x160xi1>, vector<8x160xf32>
    %cst_228 = arith.constant dense<0.000000e+00> : vector<8xf32>
    %184 = vector.multi_reduction <add>, %183, %cst_228 [1] : vector<8x160xf32> to vector<8xf32>
    %185 = vector.shape_cast %184 : vector<8xf32> to vector<8x1xf32>
    %186 = arith.addf %179, %185 : vector<8x1xf32>
    %187 = arith.mulf %152, %152 : vector<8x160xf32>
    %cst_229 = arith.constant 0.000000e+00 : f32
    %188 = vector.shape_cast %173 : vector<1x160xi1> to vector<1x160xi1>
    %189 = vector.broadcast %188 : vector<1x160xi1> to vector<8x160xi1>
    %190 = vector.broadcast %cst_229 : f32 to vector<8x160xf32>
    %191 = arith.select %189, %187, %190 : vector<8x160xi1>, vector<8x160xf32>
    %cst_230 = arith.constant dense<0.000000e+00> : vector<8xf32>
    %192 = vector.multi_reduction <add>, %191, %cst_230 [1] : vector<8x160xf32> to vector<8xf32>
    %193 = vector.shape_cast %192 : vector<8xf32> to vector<8x1xf32>
    %194 = arith.mulf %154, %154 : vector<8x160xf32>
    %cst_231 = arith.constant 0.000000e+00 : f32
    %195 = vector.shape_cast %173 : vector<1x160xi1> to vector<1x160xi1>
    %196 = vector.broadcast %195 : vector<1x160xi1> to vector<8x160xi1>
    %197 = vector.broadcast %cst_231 : f32 to vector<8x160xf32>
    %198 = arith.select %196, %194, %197 : vector<8x160xi1>, vector<8x160xf32>
    %cst_232 = arith.constant dense<0.000000e+00> : vector<8xf32>
    %199 = vector.multi_reduction <add>, %198, %cst_232 [1] : vector<8x160xf32> to vector<8xf32>
    %200 = vector.shape_cast %199 : vector<8xf32> to vector<8x1xf32>
    %201 = arith.addf %193, %200 : vector<8x1xf32>
    %cst_233 = arith.constant 3.906250e-03 : f32
    %202 = vector.broadcast %cst_233 : f32 to vector<8x1xf32>
    %203 = arith.mulf %186, %202 : vector<8x1xf32>
    %cst_234 = arith.constant 3.906250e-03 : f32
    %204 = vector.broadcast %cst_234 : f32 to vector<8x1xf32>
    %205 = arith.mulf %201, %204 : vector<8x1xf32>
    %206 = arith.mulf %203, %203 : vector<8x1xf32>
    %207 = arith.subf %205, %206 : vector<8x1xf32>
    %cst_235 = arith.constant 0.000000e+00 : f32
    %208 = vector.broadcast %cst_235 : f32 to vector<8x1xf32>
    %209 = arith.maximumf %207, %208 : vector<8x1xf32>
    %cst_236 = arith.constant 9.99999974E-6 : f32
    %210 = vector.broadcast %cst_236 : f32 to vector<8x1xf32>
    %211 = arith.addf %209, %210 : vector<8x1xf32>
    %212 = math.rsqrt %211 : vector<8x1xf32>
    %213 = vector.broadcast %203 : vector<8x1xf32> to vector<8x160xf32>
    %214 = arith.subf %152, %213 : vector<8x160xf32>
    %215 = vector.broadcast %212 : vector<8x1xf32> to vector<8x160xf32>
    %216 = arith.mulf %214, %215 : vector<8x160xf32>
    %cst_237 = arith.constant 0.000000e+00 : f32
    %217 = vector.broadcast %cst_237 : f32 to vector<8x160xf32>
    %218 = arith.maximumf %216, %217 : vector<8x160xf32>
    %219 = vector.broadcast %203 : vector<8x1xf32> to vector<8x160xf32>
    %220 = arith.subf %154, %219 : vector<8x160xf32>
    %221 = vector.broadcast %212 : vector<8x1xf32> to vector<8x160xf32>
    %222 = arith.mulf %220, %221 : vector<8x160xf32>
    %cst_238 = arith.constant 0.000000e+00 : f32
    %223 = vector.broadcast %cst_238 : f32 to vector<8x160xf32>
    %224 = arith.maximumf %222, %223 : vector<8x160xf32>
    %cst_239 = arith.constant 0.000000e+00 : f32
    %225 = vector.broadcast %cst_239 : f32 to vector<8x10xf32>
    %c0_240 = arith.constant 0 : index
    %c0_241 = arith.constant 0 : index
    %226 = vector.load %arg8[%c0_240, %c0_241] : memref<8x190xf32, #tpu.memory_space<vmem>>, vector<8x10xf32>
    tpu.vector_store %arg8[%c0_240, %c0_241], %225 {strides = array<i32>} : memref<8x190xf32, #tpu.memory_space<vmem>>, vector<8x10xf32>,
    %cst_242 = arith.constant 0.000000e+00 : f32
    %227 = vector.broadcast %cst_242 : f32 to vector<8x20xf32>
    %c0_243 = arith.constant 0 : index
    %c170 = arith.constant 170 : index
    %228 = vector.load %arg8[%c0_243, %c170] : memref<8x190xf32, #tpu.memory_space<vmem>>, vector<8x20xf32>
    tpu.vector_store %arg8[%c0_243, %c170], %227 {strides = array<i32>} : memref<8x190xf32, #tpu.memory_space<vmem>>, vector<8x20xf32>,
    %cst_244 = arith.constant 0.000000e+00 : f32
    %229 = vector.broadcast %cst_244 : f32 to vector<8x11xf32>
    %c0_245 = arith.constant 0 : index
    %c0_246 = arith.constant 0 : index
    %230 = vector.load %arg9[%c0_245, %c0_246] : memref<8x190xf32, #tpu.memory_space<vmem>>, vector<8x11xf32>
    tpu.vector_store %arg9[%c0_245, %c0_246], %229 {strides = array<i32>} : memref<8x190xf32, #tpu.memory_space<vmem>>, vector<8x11xf32>,
    %cst_247 = arith.constant 0.000000e+00 : f32
    %231 = vector.broadcast %cst_247 : f32 to vector<8x19xf32>
    %c0_248 = arith.constant 0 : index
    %c171 = arith.constant 171 : index
    %232 = vector.load %arg9[%c0_248, %c171] : memref<8x190xf32, #tpu.memory_space<vmem>>, vector<8x19xf32>
    tpu.vector_store %arg9[%c0_248, %c171], %231 {strides = array<i32>} : memref<8x190xf32, #tpu.memory_space<vmem>>, vector<8x19xf32>,
    %c0_249 = arith.constant 0 : index
    %c10_250 = arith.constant 10 : index
    %233 = vector.load %arg8[%c0_249, %c10_250] : memref<8x190xf32, #tpu.memory_space<vmem>>, vector<8x160xf32>
    tpu.vector_store %arg8[%c0_249, %c10_250], %218 {strides = array<i32>} : memref<8x190xf32, #tpu.memory_space<vmem>>, vector<8x160xf32>,
    %c9_i32 = arith.constant 9 : i32
    %234 = vector.broadcast %c9_i32 : i32 to vector<1x160xi32>
    %235 = arith.cmpi eq, %171, %234 : vector<1x160xi32>
    %cst_251 = arith.constant 0.000000e+00 : f32
    %236 = vector.shape_cast %235 : vector<1x160xi1> to vector<1x160xi1>
    %237 = vector.broadcast %236 : vector<1x160xi1> to vector<8x160xi1>
    %238 = vector.broadcast %cst_251 : f32 to vector<8x160xf32>
    %239 = arith.select %237, %238, %224 : vector<8x160xi1>, vector<8x160xf32>
    %c0_252 = arith.constant 0 : index
    %c11_253 = arith.constant 11 : index
    %240 = vector.load %arg9[%c0_252, %c11_253] : memref<8x190xf32, #tpu.memory_space<vmem>>, vector<8x160xf32>
    tpu.vector_store %arg9[%c0_252, %c11_253], %239 {strides = array<i32>} : memref<8x190xf32, #tpu.memory_space<vmem>>, vector<8x160xf32>,
    %c0_254 = arith.constant 0 : index
    %c0_255 = arith.constant 0 : index
    %241 = vector.load %arg9[%c0_254, %c0_255] : memref<8x190xf32, #tpu.memory_space<vmem>>, vector<8x160xf32>
    %c0_256 = arith.constant 0 : index
    %c0_257 = arith.constant 0 : index
    %242 = vector.load %arg10[%c0_256, %c0_257] : memref<72x160xf32, #tpu.memory_space<vmem>>, vector<8x160xf32>
    tpu.vector_store %arg10[%c0_256, %c0_257], %241 {strides = array<i32>} : memref<72x160xf32, #tpu.memory_space<vmem>>, vector<8x160xf32>,
    %c0_258 = arith.constant 0 : index
    %c0_259 = arith.constant 0 : index
    %243 = vector.load %arg8[%c0_258, %c0_259] : memref<8x190xf32, #tpu.memory_space<vmem>>, vector<8x160xf32>
    %c8_260 = arith.constant 8 : index
    %c0_261 = arith.constant 0 : index
    %244 = vector.load %arg10[%c8_260, %c0_261] : memref<72x160xf32, #tpu.memory_space<vmem>>, vector<8x160xf32>
    tpu.vector_store %arg10[%c8_260, %c0_261], %243 {strides = array<i32>} : memref<72x160xf32, #tpu.memory_space<vmem>>, vector<8x160xf32>,
    %c0_262 = arith.constant 0 : index
    %c1_263 = arith.constant 1 : index
    %245 = vector.load %arg9[%c0_262, %c1_263] : memref<8x190xf32, #tpu.memory_space<vmem>>, vector<8x160xf32>
    %c16_264 = arith.constant 16 : index
    %c0_265 = arith.constant 0 : index
    %246 = vector.load %arg10[%c16_264, %c0_265] : memref<72x160xf32, #tpu.memory_space<vmem>>, vector<8x160xf32>
    tpu.vector_store %arg10[%c16_264, %c0_265], %245 {strides = array<i32>} : memref<72x160xf32, #tpu.memory_space<vmem>>, vector<8x160xf32>,
    %c0_266 = arith.constant 0 : index
    %c10_267 = arith.constant 10 : index
    %247 = vector.load %arg9[%c0_266, %c10_267] : memref<8x190xf32, #tpu.memory_space<vmem>>, vector<8x160xf32>
    %c24_268 = arith.constant 24 : index
    %c0_269 = arith.constant 0 : index
    %248 = vector.load %arg10[%c24_268, %c0_269] : memref<72x160xf32, #tpu.memory_space<vmem>>, vector<8x160xf32>
    tpu.vector_store %arg10[%c24_268, %c0_269], %247 {strides = array<i32>} : memref<72x160xf32, #tpu.memory_space<vmem>>, vector<8x160xf32>,
    %c0_270 = arith.constant 0 : index
    %c10_271 = arith.constant 10 : index
    %249 = vector.load %arg8[%c0_270, %c10_271] : memref<8x190xf32, #tpu.memory_space<vmem>>, vector<8x160xf32>
    %c32_272 = arith.constant 32 : index
    %c0_273 = arith.constant 0 : index
    %250 = vector.load %arg10[%c32_272, %c0_273] : memref<72x160xf32, #tpu.memory_space<vmem>>, vector<8x160xf32>
    tpu.vector_store %arg10[%c32_272, %c0_273], %249 {strides = array<i32>} : memref<72x160xf32, #tpu.memory_space<vmem>>, vector<8x160xf32>,
    %c0_274 = arith.constant 0 : index
    %c11_275 = arith.constant 11 : index
    %251 = vector.load %arg9[%c0_274, %c11_275] : memref<8x190xf32, #tpu.memory_space<vmem>>, vector<8x160xf32>
    %c40_276 = arith.constant 40 : index
    %c0_277 = arith.constant 0 : index
    %252 = vector.load %arg10[%c40_276, %c0_277] : memref<72x160xf32, #tpu.memory_space<vmem>>, vector<8x160xf32>
    tpu.vector_store %arg10[%c40_276, %c0_277], %251 {strides = array<i32>} : memref<72x160xf32, #tpu.memory_space<vmem>>, vector<8x160xf32>,
    %c0_278 = arith.constant 0 : index
    %c20_279 = arith.constant 20 : index
    %253 = vector.load %arg9[%c0_278, %c20_279] : memref<8x190xf32, #tpu.memory_space<vmem>>, vector<8x160xf32>
    %c48_280 = arith.constant 48 : index
    %c0_281 = arith.constant 0 : index
    %254 = vector.load %arg10[%c48_280, %c0_281] : memref<72x160xf32, #tpu.memory_space<vmem>>, vector<8x160xf32>
    tpu.vector_store %arg10[%c48_280, %c0_281], %253 {strides = array<i32>} : memref<72x160xf32, #tpu.memory_space<vmem>>, vector<8x160xf32>,
    %c0_282 = arith.constant 0 : index
    %c20_283 = arith.constant 20 : index
    %255 = vector.load %arg8[%c0_282, %c20_283] : memref<8x190xf32, #tpu.memory_space<vmem>>, vector<8x160xf32>
    %c56_284 = arith.constant 56 : index
    %c0_285 = arith.constant 0 : index
    %256 = vector.load %arg10[%c56_284, %c0_285] : memref<72x160xf32, #tpu.memory_space<vmem>>, vector<8x160xf32>
    tpu.vector_store %arg10[%c56_284, %c0_285], %255 {strides = array<i32>} : memref<72x160xf32, #tpu.memory_space<vmem>>, vector<8x160xf32>,
    %c0_286 = arith.constant 0 : index
    %c21_287 = arith.constant 21 : index
    %257 = vector.load %arg9[%c0_286, %c21_287] : memref<8x190xf32, #tpu.memory_space<vmem>>, vector<8x160xf32>
    %c64_288 = arith.constant 64 : index
    %c0_289 = arith.constant 0 : index
    %258 = vector.load %arg10[%c64_288, %c0_289] : memref<72x160xf32, #tpu.memory_space<vmem>>, vector<8x160xf32>
    tpu.vector_store %arg10[%c64_288, %c0_289], %257 {strides = array<i32>} : memref<72x160xf32, #tpu.memory_space<vmem>>, vector<8x160xf32>,
    %c0_290 = arith.constant 0 : index
    %c0_291 = arith.constant 0 : index
    %259 = vector.load %arg4[%c0_290, %c0_291] : memref<8x72xf32, #tpu.memory_space<vmem>>, vector<8x72xf32>
    %c0_292 = arith.constant 0 : index
    %c0_293 = arith.constant 0 : index
    %260 = vector.load %arg10[%c0_292, %c0_293] : memref<72x160xf32, #tpu.memory_space<vmem>>, vector<72x160xf32>
    %cst_294 = arith.constant dense<0.000000e+00> : vector<8x160xf32>
    %261 = tpu.matmul %259, %260, %cst_294 {dimension_numbers = #tpu.dot_dimension_numbers<[1], [0], [0], [1], [0, 0, 1, 1], [], []>} : vector<8x72xf32>, vector<72x160xf32>, vector<8x160xf32> -> vector<8x160xf32>
    %262 = tpu.iota {dimensions = array<i32: 1>} : vector<1x160xi32>
    %c20_i32 = arith.constant 20 : i32
    %c0_i32_295 = arith.constant 0 : i32
    %263 = arith.cmpi eq, %c20_i32, %c0_i32_295 : i32
    %c1_i32_296 = arith.constant 1 : i32
    %264 = arith.select %263, %c1_i32_296, %c20_i32 : i32
    %265 = vector.broadcast %264 : i32 to vector<1x160xi32>
    %266 = arith.remsi %262, %265 : vector<1x160xi32>
    %c0_i32_297 = arith.constant 0 : i32
    %267 = vector.broadcast %c0_i32_297 : i32 to vector<1x160xi32>
    %268 = arith.cmpi ne, %266, %267 : vector<1x160xi32>
    %c0_i32_298 = arith.constant 0 : i32
    %269 = vector.broadcast %c0_i32_298 : i32 to vector<1x160xi32>
    %270 = arith.cmpi slt, %266, %269 : vector<1x160xi32>
    %c0_i32_299 = arith.constant 0 : i32
    %271 = arith.cmpi slt, %264, %c0_i32_299 : i32
    %272 = vector.broadcast %271 : i1 to vector<1x160xi1>
    %273 = vector.broadcast %272 : vector<1x160xi1> to vector<1x160xi1>
    %274 = arith.xori %270, %273 : vector<1x160xi1>
    %275 = arith.andi %274, %268 : vector<1x160xi1>
    %276 = vector.broadcast %264 : i32 to vector<1x160xi32>
    %277 = arith.addi %266, %276 : vector<1x160xi32>
    %278 = arith.select %275, %277, %266 : vector<1x160xi1>, vector<1x160xi32>
    %c8_i32_300 = arith.constant 8 : i32
    %279 = vector.broadcast %c8_i32_300 : i32 to vector<1x160xi32>
    %280 = arith.cmpi slt, %278, %279 : vector<1x160xi32>
    %cst_301 = arith.constant 0.000000e+00 : f32
    %281 = vector.shape_cast %280 : vector<1x160xi1> to vector<1x160xi1>
    %282 = vector.broadcast %281 : vector<1x160xi1> to vector<8x160xi1>
    %283 = vector.broadcast %cst_301 : f32 to vector<8x160xf32>
    %284 = arith.select %282, %261, %283 : vector<8x160xi1>, vector<8x160xf32>
    %cst_302 = arith.constant dense<0.000000e+00> : vector<8xf32>
    %285 = vector.multi_reduction <add>, %284, %cst_302 [1] : vector<8x160xf32> to vector<8xf32>
    %286 = vector.shape_cast %285 : vector<8xf32> to vector<8x1xf32>
    %287 = arith.mulf %261, %261 : vector<8x160xf32>
    %cst_303 = arith.constant 0.000000e+00 : f32
    %288 = vector.shape_cast %280 : vector<1x160xi1> to vector<1x160xi1>
    %289 = vector.broadcast %288 : vector<1x160xi1> to vector<8x160xi1>
    %290 = vector.broadcast %cst_303 : f32 to vector<8x160xf32>
    %291 = arith.select %289, %287, %290 : vector<8x160xi1>, vector<8x160xf32>
    %cst_304 = arith.constant dense<0.000000e+00> : vector<8xf32>
    %292 = vector.multi_reduction <add>, %291, %cst_304 [1] : vector<8x160xf32> to vector<8xf32>
    %293 = vector.shape_cast %292 : vector<8xf32> to vector<8x1xf32>
    %cst_305 = arith.constant 1.562500e-02 : f32
    %294 = vector.broadcast %cst_305 : f32 to vector<8x1xf32>
    %295 = arith.mulf %286, %294 : vector<8x1xf32>
    %cst_306 = arith.constant 1.562500e-02 : f32
    %296 = vector.broadcast %cst_306 : f32 to vector<8x1xf32>
    %297 = arith.mulf %293, %296 : vector<8x1xf32>
    %298 = arith.mulf %295, %295 : vector<8x1xf32>
    %299 = arith.subf %297, %298 : vector<8x1xf32>
    %cst_307 = arith.constant 0.000000e+00 : f32
    %300 = vector.broadcast %cst_307 : f32 to vector<8x1xf32>
    %301 = arith.maximumf %299, %300 : vector<8x1xf32>
    %302 = vector.broadcast %295 : vector<8x1xf32> to vector<8x160xf32>
    %303 = arith.subf %261, %302 : vector<8x160xf32>
    %cst_308 = arith.constant 9.99999974E-6 : f32
    %304 = vector.broadcast %cst_308 : f32 to vector<8x1xf32>
    %305 = arith.addf %301, %304 : vector<8x1xf32>
    %306 = math.rsqrt %305 : vector<8x1xf32>
    %307 = vector.broadcast %306 : vector<8x1xf32> to vector<8x160xf32>
    %308 = arith.mulf %303, %307 : vector<8x160xf32>
    %cst_309 = arith.constant 0.000000e+00 : f32
    %309 = vector.broadcast %cst_309 : f32 to vector<8x160xf32>
    %310 = arith.maximumf %308, %309 : vector<8x160xf32>
    %c0_310 = arith.constant 0 : index
    %c0_311 = arith.constant 0 : index
    %c0_312 = arith.constant 0 : index
    %311 = vector.load %arg5[%c0_310, %c0_311, %c0_312] : memref<1x8x160xf32, #tpu.memory_space<vmem>>, vector<1x8x160xf32>
    %312 = vector.shape_cast %311 : vector<1x8x160xf32> to vector<8x160xf32>
    %313 = vector.shape_cast %310 : vector<8x160xf32> to vector<1x8x160xf32>
    tpu.vector_store %arg5[%c0_310, %c0_311, %c0_312], %313 {strides = array<i32>} : memref<1x8x160xf32, #tpu.memory_space<vmem>>, vector<1x8x160xf32>,
    return
  }
  func.func @transform_0(%arg0: i32) -> (i32, i32, i32) {
    %c0_i32 = arith.constant 0 : i32
    %c0_i32_0 = arith.constant 0 : i32
    %c0_i32_1 = arith.constant 0 : i32
    return %arg0, %c0_i32, %c0_i32_0 : i32, i32, i32
  }
  func.func @transform_1(%arg0: i32) -> (i32, i32, i32) {
    %c0_i32 = arith.constant 0 : i32
    %c0_i32_0 = arith.constant 0 : i32
    %c0_i32_1 = arith.constant 0 : i32
    return %arg0, %c0_i32, %c0_i32_0 : i32, i32, i32
  }
  func.func @transform_2(%arg0: i32) -> (i32, i32) {
    %c0_i32 = arith.constant 0 : i32
    %c0_i32_0 = arith.constant 0 : i32
    %c0_i32_1 = arith.constant 0 : i32
    return %c0_i32, %c0_i32_0 : i32, i32
  }
  func.func @transform_3(%arg0: i32) -> (i32, i32) {
    %c0_i32 = arith.constant 0 : i32
    %c0_i32_0 = arith.constant 0 : i32
    %c0_i32_1 = arith.constant 0 : i32
    return %c0_i32, %c0_i32_0 : i32, i32
  }
  func.func @transform_4(%arg0: i32) -> (i32, i32, i32) {
    %c0_i32 = arith.constant 0 : i32
    %c0_i32_0 = arith.constant 0 : i32
    %c0_i32_1 = arith.constant 0 : i32
    return %arg0, %c0_i32, %c0_i32_0 : i32, i32, i32
  }
}

</mosaic_0001>

<bundles_post_ra>
// kernel: tpu_custom_call.1
= control target key start
LH: loop header
LB: loop body
LE: loop exit
PB: predicated region body
PF: predicated region fallthrough
CT: control target
= control target key end

     0   :  { %s2580_s0 = inlined_call_operand.hbm [shape: f32[2,4,210], index: 0, kind: input, shape index: {}]   ;;  %s2581_s1 = inlined_call_operand.hbm [shape: f32[2,4,210], index: 1, kind: input, shape index: {}]   ;;  %s2582_s2 = inlined_call_operand.hbm [shape: f32[8,100], index: 2, kind: input, shape index: {}]   ;;  %s2583_s3 = inlined_call_operand.hbm [shape: f32[8,72], index: 3, kind: input, shape index: {}]   ;;  %s2584_s4 = inlined_call_operand.hbm [shape: f32[2,8,160], index: 4, kind: output, shape index: {}]  }
   0x1   :  { %2589 = sst [smem:[#allocation21_spill]] %s2582_s2 }
   0x2   :  { %9 = vsyncpa [#allocation8], 0 }
   0x3   :  { %11 = vsyncpa [#allocation8 + $0x1], 0 }
   0x4   :  { %12 = vsyncpa [#allocation11], 0 }
   0x5   :  { %14 = vsyncpa [#allocation11 + $0x1], 0 }
   0x6   :  { %15 = vsyncpa [#allocation14], 0 }
   0x7   :  { %16 = vsyncpa [#allocation9], 0 }
   0x8   :  { %18 = vsyncpa [#allocation9 + $0x1], 0  ;;  %s1974_s15 = smov 0   ;;  %s1976_s16 = smov 0  }
   0x9   :  { %s1978_s17 = smov 0   ;;  %s1980_s18 = smov 0  }
   0xa LB: > { %s1995_s19 = sadd.s32 4294967295, %s1925_s18   ;;  %s1607_s20 = sadd.s32 4294967294, %s1925_s18   ;;  %s1925_s18 = sphi %s1980_s18, %s2610_s18   ;;  %s1921_s17 = sphi %s1978_s17, %s2609_s17   ;;  %s1917_s16 = sphi %s1976_s16, %s2608_s16   ;;  %s1913_s15 = sphi %s1974_s15, %s2607_s15  }
   0xb   : > { %p44_p0 = scmp.ne.s32.totalorder %s1917_s16, %s1913_s15  ;;  %p2585_p1 = scmp.eq.s32.totalorder %s1995_s19, 0 }
   0xc   : > { %p142_p3 = scmp.eq.s32.totalorder %s1607_s20, 1  ;;  %p1608_p5 = scmp.ge.s32.totalorder %s1925_s18, 1 }
   0xd   : > { %p2004_p4 = por %p2585_p1, %p44_p0  ;;  %p149_p7 = scmp.lt.s32.totalorder %s1925_s18, 3 }
   0xe   : > { %p2009_p6 = por %p142_p3, %p44_p0  ;;  %s1927_s24 = smov [#allocation12]  }
   0xf   : > { %s2590_s21 = scalar_select %p2004_p4, 1, 0 }
  0x10   : > { %s2591_s22 = scalar_select %p2009_p6, 1, 0 }
  0x11   : > { %p2014_p8 = pnand %p1608_p5, %p149_p7  ;;  %s162_s25 = sshll.u32 %s1927_s24, 4  ;;  %s163_s25 = int_to_ptr.vmem [resolvable:$true] %s162_s25 }
  0x12   : > { %s1928_s26 = smov [#allocation13]   ;;  %s2028_s29 = sadd.s32 1, %s1925_s18  }
  0x13   : > { %s2592_s23 = scalar_select %p2014_p8, 1, 0 }
  0x14   : > { %p1657_p10 = pneg %p2014_p8  ;;  %s173_s27 = sshll.u32 %s1928_s26, 4  ;;  %s174_s27 = int_to_ptr.vmem [resolvable:$true] %s173_s27 }
  0x15   : > { %s28_s30 = ssub.s32 %s1925_s18, %s2028_s29  ;;  %s1752_s5 = scalar_lea.vmem %s163_s25, 128 }
  0x16   : > { %p2023_p11 = pnand %p1657_p10, %p2585_p1  ;;  %p1753_p13 = scmp.ne.s32.totalorder %s163_s25, %s1752_s5 }
  0x17   : > { %p1760_p5 = scmp.lt.s32.totalorder %s163_s25, %s163_s25  ;;  %p1761_p7 = scmp.lt.s32.totalorder %s1752_s5, %s1752_s5 }
  0x18   : > { %p1743_p12 = pneg %p2023_p11 }
  0x19   : > { %p1762_p10 = por %p1761_p7, %p1760_p5 }
  0x1a   : > { %p1755_p0 = pnand %p1753_p13, %p1743_p12 }
  0x1c   : > { %p1756_p3 = pneg %p1755_p0 }
  0x1e   : > { %p1763_p9 = pnand %p1762_p10, %p1756_p3 }
  0x20   : > { %1766 = shalt.err (!%p1763_p9)
}
  0x21   : > { %s2594_s2 = sld [smem:[#allocation21_spill]]  ;;  %s1778_s8 = scalar_lea.vmem %s174_s27, 128 }
  0x22   : > { %p1779_p1 = scmp.ne.s32.totalorder %s174_s27, %s1778_s8  ;;  %p1786_p13 = scmp.lt.s32.totalorder %s174_s27, %s174_s27 }
  0x23   : > { %p1787_p0 = scmp.lt.s32.totalorder %s1778_s8, %s1778_s8 }
  0x24   : > { %p1781_p2 = pnand %p1779_p1, %p1743_p12 }
  0x25   : > { %p1788_p4 = por %p1787_p0, %p1786_p13 }
  0x26   : > { %p1782_p6 = pneg %p1781_p2 }
  0x27   : > { %1660 = dma.hbm_to_vmem [thread:$0]  (!%p2023_p11), %s2594_s2, 128, %s163_s25, [#allocation11]  }
  0x28   : > { %p1789_p8 = pnand %p1788_p4, %p1782_p6 }
  0x2a   : > { %1792 = shalt.err (!%p1789_p8)
}
  0x2b   : > { %1663 = dma.hbm_to_vmem [thread:$0]  (!%p2023_p11), %s2583_s3, 128, %s174_s27, [#allocation14]  }
  0x2c   : > { %p29_p1 = scmp.eq.s32.totalorder %s28_s30, 0  ;;  %s31_s11 = sadd.s32 1, %s1921_s17 }
  0x2d   : > { %p38_p2 = scmp.ne.s32.totalorder %s1921_s17, %s1917_s16  ;;  %p39_p4 = scmp.eq.s32.totalorder %s1925_s18, 0 }
  0x2e   : > { %s2055_s12 = scalar_select %p29_p1, %s1921_s17, %s31_s11  }
  0x2f   : > { %p40_p6 = por %p39_p4, %p38_p2  ;;  %p2595_p8 = scmp.eq.s32.totalorder %s1995_s19, 1 }
  0x30   : > { %p1677_p12 = scmp.lt.s32.totalorder %s1925_s18, 2  ;;  %s184_s14 = sand.u32 1, %s1921_s17  }
  0x31   : > { %p2059_p9 = por %p2595_p8, %p38_p2  ;;  %s2065_s20 = sshll.u32 %s184_s14, 3 }
  0x32   : > { %s1636_s24 = sshll.u32 %s1925_s18, 7  ;;  %s188_s28 = scalar_lea.vmem [#allocation7], %s2065_s20 }
  0x33   : > { %s2596_s13 = scalar_select %p2059_p9, 1, 0 }
  0x34   : > { %s2071_s27 = scalar_lea.hbm %s2580_s0, %s1636_s24  ;;  %s196_s30 = sshll.u32 %s188_s28, 4  ;;  %s2074_s30 = int_to_ptr.vmem [resolvable:$true] %s196_s30 }
  0x35   : > { %p2076_p11 = pnand %p1677_p12, %p40_p6  ;;  %s2083_s8 = scalar_lea.hbm %s2581_s1, %s1636_s24 }
  0x36   : > { %s203_s9 = sand.u32 1, %s1925_s18   ;;  %s185_s10 = scalar_lea.sflag [#allocation8], %s184_s14 }
  0x37   : > { %s1793_s11 = scalar_lea.hbm %s2071_s27, 128  ;;  %p1795_p5 = pneg %p2076_p11 }
  0x38   : > { %p1794_p3 = scmp.ne.s32.totalorder %s2071_s27, %s1793_s11  ;;  %s1798_s28 = scalar_lea.hbm %s2580_s0, 256 }
  0x39   : > { %p1799_p13 = scmp.lt.s32.totalorder %s2071_s27, %s2580_s0  ;;  %p1800_p0 = scmp.lt.s32.totalorder %s1798_s28, %s1793_s11 }
  0x3a   : > { %p1796_p7 = pnand %p1795_p5, %p1794_p3 }
  0x3b   : > { %p1801_p1 = por %p1800_p0, %p1799_p13 }
  0x3c   : > { %p1797_p10 = pneg %p1796_p7 }
  0x3e   : > { %p1802_p2 = pnand %p1801_p1, %p1797_p10 }
  0x40   : > { %1805 = shalt.err (!%p1802_p2)
}
  0x41   : > { %s1806_s14 = scalar_lea.vmem %s2074_s30, 128  ;;  %s1929_s24 = smov [#allocation7]  }
  0x42   : > { %p1807_p4 = scmp.ne.s32.totalorder %s2074_s30, %s1806_s14  ;;  %s1811_s7 = sshll.u32 %s1929_s24, 4  ;;  %s1812_s7 = int_to_ptr.vmem [resolvable:$false] %s1811_s7 }
  0x43   : > { %s1813_s25 = scalar_lea.vmem %s1812_s7, 256  ;;  %p1814_p12 = scmp.lt.s32.totalorder %s2074_s30, %s1812_s7 }
  0x44   : > { %p1809_p6 = pnand %p1807_p4, %p1795_p5  ;;  %p1815_p3 = scmp.lt.s32.totalorder %s1813_s25, %s1806_s14 }
  0x46   : > { %p1810_p8 = pneg %p1809_p6  ;;  %p1816_p7 = por %p1815_p3, %p1814_p12 }
  0x48   : > { %p1817_p13 = pnand %p1816_p7, %p1810_p8 }
  0x4a   : > { %1820 = shalt.err (!%p1817_p13)
}
  0x4b   : > { %1667 = dma.hbm_to_vmem [thread:$0]  (!%p2076_p11), %s2071_s27, 128, %s2074_s30, %s185_s10  }
  0x4c   : > { %s207_s2 = scalar_lea.vmem [#allocation10], %s2065_s20  ;;  %s204_s26 = scalar_lea.sflag [#allocation11], %s203_s9 }
  0x4d   : > { %s215_s11 = sshll.u32 %s207_s2, 4  ;;  %s1821_s28 = scalar_lea.hbm %s2083_s8, 128  ;;  %s216_s11 = int_to_ptr.vmem [resolvable:$true] %s215_s11 }
  0x4e   : > { %p1822_p10 = scmp.ne.s32.totalorder %s2083_s8, %s1821_s28  ;;  %s1826_s24 = scalar_lea.hbm %s2581_s1, 256 }
  0x4f   : > { %p1827_p2 = scmp.lt.s32.totalorder %s2083_s8, %s2581_s1  ;;  %p1828_p4 = scmp.lt.s32.totalorder %s1826_s24, %s1821_s28 }
  0x50   : > { %p1824_p0 = pnand %p1822_p10, %p1795_p5 }
  0x51   : > { %p1829_p6 = por %p1828_p4, %p1827_p2 }
  0x52   : > { %p1825_p1 = pneg %p1824_p0 }
  0x54   : > { %p1830_p8 = pnand %p1829_p6, %p1825_p1 }
  0x56   : > { %1833 = shalt.err (!%p1830_p8)
}
  0x57   : > { %s1834_s20 = scalar_lea.vmem %s216_s11, 128  ;;  %s1930_s27 = smov [#allocation10]  }
  0x58   : > { %p1835_p12 = scmp.ne.s32.totalorder %s216_s11, %s1834_s20  ;;  %s1839_s30 = sshll.u32 %s1930_s27, 4  ;;  %s1840_s30 = int_to_ptr.vmem [resolvable:$false] %s1839_s30 }
  0x59   : > { %s1841_s9 = scalar_lea.vmem %s1840_s30, 256  ;;  %p1842_p13 = scmp.lt.s32.totalorder %s216_s11, %s1840_s30 }
  0x5a   : > { %p1837_p3 = pnand %p1835_p12, %p1795_p5  ;;  %p1843_p10 = scmp.lt.s32.totalorder %s1841_s9, %s1834_s20 }
  0x5c   : > { %p1838_p7 = pneg %p1837_p3  ;;  %p1844_p0 = por %p1843_p10, %p1842_p13 }
  0x5e   : > { %p1845_p9 = pnand %p1844_p0, %p1838_p7 }
  0x60   : > { %1848 = shalt.err (!%p1845_p9)
}
  0x61   : > { %1670 = dma.hbm_to_vmem [thread:$0]  (!%p2076_p11), %s2083_s8, 128, %s216_s11, %s204_s26  }
  0x62   : > { %p2598_p1 = scmp.ne.s32.totalorder %s2592_s23, 0 }
  0x63   : > { %s2134_s10 = sand.u32 (!%p2598_p1), 1, %s1917_s16   ;;  %p2599_p5 = scmp.ne.s32.totalorder (!%p2598_p1), %s2590_s21, 0 }
  0x64   : > { %224 = sbr.rel (%p2598_p1) target bundleno = 1457 (0x5b1), region = 36  ;;  %s1619_s2 = sshll.u32 (!%p2598_p1), %s2134_s10, 3 }
  0x65   : > { %s227_s28 = scalar_lea.sflag (!%p2598_p1), [#allocation8], %s2134_s10  ;;  %s2138_s6 = scalar_lea.vmem (!%p2598_p1), [#allocation7], %s1619_s2 }
  0x69   : > { %1892 = dma.done.wait (%p2599_p5), %s227_s28, 128  }
  0x6a   : > { %1894 = vsyncadd (%p2599_p5), %s227_s28, 4294967168  ;;  %s235_s5 = sand.u32 1, %s1995_s19   ;;  %s2145_s8 = scalar_lea.vmem [#allocation10], %s1619_s2 }
  0x6b   : > { %s236_s23 = scalar_lea.sflag [#allocation11], %s235_s5 }
  0x6c   : > { %1896 = dma.done.wait (%p2599_p5), %s236_s23, 128  }
  0x6d   : > { %1898 = vsyncadd (%p2599_p5), %s236_s23, 4294967168  ;;  %p2600_p9 = scmp.eq.s32.totalorder %s1995_s19, 0 }
  0x6f   : > { %1900 = dma.done.wait (%p2600_p9), [#allocation11], 128   ;;  %p2601_p11 = pmov %p2600_p9 }
  0x70   : > { %p2602_p2 = pmov %p2600_p9 }
  0x71   : > { %1902 = vsyncadd (%p2601_p11), [#allocation11], 4294967168 }
  0x72   : > { %1904 = dma.done.wait (%p2602_p2), [#allocation14], 128   ;;  %p2603_p4 = pmov %p2602_p2 }
  0x73   : > { %v2160_v0 = vld [vmem:[%s2145_s8] sm:$0xff]  ;;  %v2163_v1 = vld [vmem:[%s2138_s6] sm:$0xff]  ;;  %s1931_s21 = smov 86   ;;  %s1932_s11 = smov 87   ;;  %vm282_vm0 = vcmask 257024   ;;  %vm845_vm1 = vcmask 703488  }
  0x74   : > { %1906 = vsyncadd (%p2603_p4), [#allocation14], 4294967168  ;;  %866 = vrot.lane.b32.xlu1 %v2160_v0, %s1931_s21  ;;  %v2168_v2 = vcombine.high %v2160_v0, %v2160_v0  ;;  %854 = vrot.lane.b32.xlu0 %v2163_v1, %s1931_s21  ;;  %v2173_v3 = vcombine.high %v2163_v1, %v2163_v1  ;;  %v2183_v4 = vcombine.low %v2160_v0, %v2160_v0  ;;  %s1933_s26 = smov 88   ;;  %s1934_s14 = smov 97   ;;  %vm796_vm2 = vcmask 711680   ;;  %v277_v57 = vld [vmem:[%s2138_s6] sm:$0xff] }
  0x75   : > { %v2189_v5 = vcombine.low %v2163_v1, %v2163_v1  ;;  %s1935_s24 = smov 96   ;;  %s1936_s7 = smov 98   ;;  %vm906_vm3 = vcmask 1043456   ;;  %vm295_vm4 = vcmask 261124   ;;  %vm759_vm5 = vcmask 719872   ;;  %v290_v59 = vld [vmem:[%s2145_s8] sm:$0xff] }
  0x76   : > { %s1937_s25 = smov 106   ;;  %s1938_s20 = smov 107   ;;  %vm673_vm6 = vcmask 793600   ;;  %vm722_vm7 = vcmask 785408   ;;  %v279_v58 = vcombine.high %v277_v57, %v277_v57  ;;  %281 = vst [vmem:[#allocation2] sm:$0xf] %v277_v57  ;;  %v292_v60 = vcombine.low %v290_v59, %v290_v59 }
  0x77   : > { %s1939_s27 = smov 108   ;;  %s1940_s30 = smov 117   ;;  %296 = vst.msk [vmem:[#allocation2 + $0x8] sm:$0xf0] %vm295_vm4, %v290_v59  ;;  %288 = vst [vmem:[#allocation3] sm:$0xf] %v290_v59 }
  0x78   : > { %868 = vrot.lane.b32.xlu1 %v2168_v2, %s1931_s21  ;;  %805 = vrot.lane.b32.xlu0 %v2163_v1, %s1932_s11  ;;  %s1941_s9 = smov 116   ;;  %s1942_s2 = smov 118   ;;  %283 = vst.msk [vmem:[#allocation2 + $0x8] sm:$0xf] %vm282_vm0, %v279_v58  ;;  %294 = vst [vmem:[#allocation2] sm:$0xf0] %v292_v60 }
  0x79   : > { %s1943_s28 = smov 126   ;;  %s1944_s6 = smov 127   ;;  %vm636_vm8 = vcmask 801792   ;;  %vm599_vm9 = vcmask 867328   ;;  %vm550_vm10 = vcmask 875520   ;;  %vm513_vm11 = vcmask 883712  }
  0x7a   : > { %vm427_vm12 = vcmask 957440   ;;  %vm476_vm13 = vcmask 949248   ;;  %vm390_vm14 = vcmask 965632   ;;  %vm353_vm15 = vcmask 1031168   ;;  %s1946_s5 = smov 11   ;;  %s1947_s23 = smov 10  }
  0x7b   : > { %s1623_s8 = sshll.u32 %s2134_s10, 4  ;;  %p2604_p8 = scmp.ne.s32.totalorder %s2596_s13, 0 }
  0x7c   : > { %856 = vrot.lane.b32.xlu0 %v2173_v3, %s1931_s21  ;;  %807 = vrot.lane.b32.xlu1 %v2173_v3, %s1932_s11 }
  0x80   : > { %817 = vrot.lane.b32.xlu0 %v2160_v0, %s1932_s11  ;;  %819 = vrot.lane.b32.xlu1 %v2168_v2, %s1932_s11 }
  0x84   : > { %829 = vrot.lane.b32.xlu0 %v2183_v4, %s1932_s11  ;;  %831 = vrot.lane.b32.xlu1 %v2160_v0, %s1932_s11 }
  0x88   : > { %841 = vrot.lane.b32.xlu0 %v2189_v5, %s1931_s21  ;;  %843 = vrot.lane.b32.xlu1 %v2163_v1, %s1931_s21  ;;  %s1638_s21 = sshll.u32 %s1995_s19, 8  ;;  %s1948_s19 = smov [#allocation15]  }
  0x8c   : > { %755 = vrot.lane.b32.xlu0 %v2163_v1, %s1933_s26  ;;  %757 = vrot.lane.b32.xlu1 %v2173_v3, %s1933_s26 }
  0x90   : > { %768 = vrot.lane.b32.xlu0 %v2160_v0, %s1933_s26  ;;  %770 = vrot.lane.b32.xlu1 %v2168_v2, %s1933_s26 }
  0x94   : > { %780 = vrot.lane.b32.xlu0 %v2183_v4, %s1933_s26  ;;  %782 = vrot.lane.b32.xlu1 %v2160_v0, %s1933_s26 }
  0x98   : > { %792 = vrot.lane.b32.xlu0 %v2189_v5, %s1932_s11  ;;  %794 = vrot.lane.b32.xlu1 %v2163_v1, %s1932_s11  ;;  %s276_s11 = scalar_lea.vmem [#allocation15], %s1623_s8 }
  0x99   : > { %s1495_s26 = sshll.u32 %s276_s11, 4  ;;  %s1496_s26 = int_to_ptr.vmem [resolvable:$true] %s1495_s26 }
  0x9c   : > { %706 = vrot.lane.b32.xlu0 %v2160_v0, %s1934_s14  ;;  %708 = vrot.lane.b32.xlu1 %v2168_v2, %s1934_s14 }
  0xa0   : > { %718 = vrot.lane.b32.xlu0 %v2163_v1, %s1935_s24  ;;  %720 = vrot.lane.b32.xlu1 %v2173_v3, %s1935_s24 }
  0xa4   : > { %731 = vrot.lane.b32.xlu0 %v2189_v5, %s1935_s24  ;;  %733 = vrot.lane.b32.xlu1 %v2163_v1, %s1935_s24 }
  0xa8   : > { %743 = vrot.lane.b32.xlu0 %v2183_v4, %s1935_s24  ;;  %745 = vrot.lane.b32.xlu1 %v2160_v0, %s1935_s24 }
  0xac   : > { %657 = vrot.lane.b32.xlu0 %v2160_v0, %s1936_s7  ;;  %659 = vrot.lane.b32.xlu1 %v2168_v2, %s1936_s7 }
  0xb0   : > { %669 = vrot.lane.b32.xlu0 %v2163_v1, %s1934_s14  ;;  %671 = vrot.lane.b32.xlu1 %v2173_v3, %s1934_s14 }
  0xb4   : > { %682 = vrot.lane.b32.xlu0 %v2189_v5, %s1934_s14  ;;  %684 = vrot.lane.b32.xlu1 %v2163_v1, %s1934_s14 }
  0xb8   : > { %694 = vrot.lane.b32.xlu0 %v2183_v4, %s1934_s14  ;;  %696 = vrot.lane.b32.xlu1 %v2160_v0, %s1934_s14 }
  0xbc   : > { %608 = vrot.lane.b32.xlu0 %v2163_v1, %s1937_s25  ;;  %610 = vrot.lane.b32.xlu1 %v2173_v3, %s1937_s25 }
  0xc0   : > { %620 = vrot.lane.b32.xlu0 %v2160_v0, %s1937_s25  ;;  %622 = vrot.lane.b32.xlu1 %v2168_v2, %s1937_s25 }
  0xc4   : > { %632 = vrot.lane.b32.xlu0 %v2189_v5, %s1936_s7  ;;  %634 = vrot.lane.b32.xlu1 %v2163_v1, %s1936_s7 }
  0xc8   : > { %645 = vrot.lane.b32.xlu0 %v2183_v4, %s1936_s7  ;;  %647 = vrot.lane.b32.xlu1 %v2160_v0, %s1936_s7  ;;  %s2542_s7 = scalar_lea.hbm %s2584_s4, %s1638_s21 }
  0xcc   : > { %559 = vrot.lane.b32.xlu0 %v2163_v1, %s1938_s20  ;;  %561 = vrot.lane.b32.xlu1 %v2173_v3, %s1938_s20 }
  0xd0   : > { %571 = vrot.lane.b32.xlu0 %v2160_v0, %s1938_s20  ;;  %573 = vrot.lane.b32.xlu1 %v2168_v2, %s1938_s20 }
  0xd4   : > { %583 = vrot.lane.b32.xlu0 %v2183_v4, %s1938_s20  ;;  %585 = vrot.lane.b32.xlu1 %v2160_v0, %s1938_s20 }
  0xd8   : > { %595 = vrot.lane.b32.xlu0 %v2189_v5, %s1937_s25  ;;  %597 = vrot.lane.b32.xlu1 %v2163_v1, %s1937_s25  ;;  %s1481_s25 = scalar_lea.sflag [#allocation9], %s2134_s10 }
  0xdc   : > { %509 = vrot.lane.b32.xlu0 %v2163_v1, %s1939_s27  ;;  %511 = vrot.lane.b32.xlu1 %v2173_v3, %s1939_s27 }
  0xe0   : > { %522 = vrot.lane.b32.xlu0 %v2160_v0, %s1939_s27  ;;  %524 = vrot.lane.b32.xlu1 %v2168_v2, %s1939_s27 }
  0xe4   : > { %534 = vrot.lane.b32.xlu0 %v2183_v4, %s1939_s27  ;;  %536 = vrot.lane.b32.xlu1 %v2160_v0, %s1939_s27 }
  0xe6   : > { %v867_v6 = vpop.permute.xlu1 %866  ;;  %v855_v7 = vpop.permute.xlu0 %854 }
  0xe8   : > { %546 = vrot.lane.b32.xlu0 %v2189_v5, %s1938_s20  ;;  %548 = vrot.lane.b32.xlu1 %v2163_v1, %s1938_s20 }
  0xea   : > { %v869_v8 = vpop.permute.xlu1 %868  ;;  %v806_v9 = vpop.permute.xlu0 %805 }
  0xeb   : > { %v870_v10 = vsel %vm845_vm1, %v867_v6, %v869_v8  ;;  %874 = vst.msk [vmem:[#allocation3 + $0xc8] sm:$0xf] %vm282_vm0, %v869_v8 }
  0xec   : > { %873 = vst [vmem:[#allocation3 + $0xc0] sm:$0xf] %v870_v10  ;;  %460 = vrot.lane.b32.xlu0 %v2160_v0, %s1940_s30  ;;  %462 = vrot.lane.b32.xlu1 %v2168_v2, %s1940_s30 }
  0xee   : > { %v857_v11 = vpop.permute.xlu0 %856  ;;  %v808_v12 = vpop.permute.xlu1 %807 }
  0xef   : > { %v858_v13 = vsel %vm845_vm1, %v855_v7, %v857_v11  ;;  %862 = vst.msk [vmem:[#allocation2 + $0xc8] sm:$0xf] %vm282_vm0, %v857_v11  ;;  %v809_v14 = vsel %vm796_vm2, %v806_v9, %v808_v12  ;;  %813 = vst.msk [vmem:[#allocation2 + $0xb8] sm:$0xf] %vm282_vm0, %v808_v12  ;;  %v286_v9 = vcombine.high %v290_v59, %v290_v59 }
  0xf0   : > { %861 = vst [vmem:[#allocation2 + $0xc0] sm:$0xf] %v858_v13  ;;  %812 = vst [vmem:[#allocation2 + $0xb0] sm:$0xf] %v809_v14  ;;  %472 = vrot.lane.b32.xlu0 %v2163_v1, %s1941_s9  ;;  %474 = vrot.lane.b32.xlu1 %v2173_v3, %s1941_s9 }
  0xf1   : > { %289 = vst.msk [vmem:[#allocation3 + $0x8] sm:$0xf] %vm282_vm0, %v286_v9 }
  0xf2   : > { %v818_v15 = vpop.permute.xlu0 %817  ;;  %v820_v16 = vpop.permute.xlu1 %819  ;;  %v1009_v17 = vld [vmem:[#allocation3 + $0xc8] sm:$0xf] }
  0xf3   : > { %v821_v18 = vsel %vm796_vm2, %v818_v15, %v820_v16  ;;  %825 = vst.msk [vmem:[#allocation3 + $0xb8] sm:$0xf] %vm282_vm0, %v820_v16  ;;  %1627 = vmatprep.subr.msk.mxu1 %vm906_vm3, %v1009_v17  ;;  %v1008_v19 = vld [vmem:[#allocation3 + $0xc0] sm:$0xf]  ;;  %v1945_v16 = vmov 0.0  }
  0xf4   : > { %824 = vst [vmem:[#allocation3 + $0xb0] sm:$0xf] %v821_v18  ;;  %1628 = vmatpush1.msk.msra.mxu1 %vm906_vm3, %v1008_v19  ;;  %485 = vrot.lane.b32.xlu0 %v2189_v5, %s1941_s9 }
  0xf5   : > { %487 = vrot.lane.b32.xlu1 %v2163_v1, %s1941_s9  ;;  %977 = vmatprep.mubr.f32.mxu0 %v1945_v16 }
  0xf6   : > { %v830_v20 = vpop.permute.xlu0 %829  ;;  %v832_v21 = vpop.permute.xlu1 %831  ;;  %v901_v22 = vld [vmem:[#allocation2 + $0xc8] sm:$0xf]  ;;  %1080 = vmatprep.mubr.f32.mxu1 %v1945_v16 }
  0xf7   : > { %v833_v23 = vsel %vm796_vm2, %v830_v20, %v832_v21  ;;  %837 = vst.msk [vmem:[#allocation2 + $0xb8] sm:$0xf0] %vm295_vm4, %v832_v21  ;;  %1624 = vmatprep.subr.msk.mxu0 %vm906_vm3, %v901_v22  ;;  %v900_v24 = vld [vmem:[#allocation2 + $0xc0] sm:$0xf] }
  0xf8   : > { %836 = vst [vmem:[#allocation2 + $0xb0] sm:$0xf0] %v833_v23  ;;  %1625 = vmatpush1.msk.msra.mxu0 %vm906_vm3, %v900_v24  ;;  %497 = vrot.lane.b32.xlu0 %v2183_v4, %s1941_s9 }
  0xf9   : > { %499 = vrot.lane.b32.xlu1 %v2160_v0, %s1941_s9 }
  0xfa   : > { %v842_v25 = vpop.permute.xlu0 %841  ;;  %v844_v26 = vpop.permute.xlu1 %843 }
  0xfb   : > { %v846_v27 = vsel %vm845_vm1, %v842_v25, %v844_v26  ;;  %850 = vst.msk [vmem:[#allocation3 + $0xb8] sm:$0xf0] %vm295_vm4, %v844_v26  ;;  %vm304_vm1 = vcmask 1039360  }
  0xfc   : > { %849 = vst [vmem:[#allocation3 + $0xb0] sm:$0xf0] %v846_v27  ;;  %411 = vrot.lane.b32.xlu0 %v2160_v0, %s1942_s2 }
  0xfd   : > { %413 = vrot.lane.b32.xlu1 %v2168_v2, %s1942_s2 }
  0xfe   : > { %v756_v28 = vpop.permute.xlu0 %755  ;;  %v758_v29 = vpop.permute.xlu1 %757  ;;  %v899_v30 = vld [vmem:[#allocation2 + $0xb8] sm:$0xff] }
  0xff   : > { %v760_v31 = vsel %vm759_vm5, %v756_v28, %v758_v29  ;;  %764 = vst.msk [vmem:[#allocation2 + $0xa8] sm:$0xf] %vm282_vm0, %v758_v29  ;;  %921 = vmatprep.subr.mxu0 %v899_v30  ;;  %v898_v32 = vld [vmem:[#allocation2 + $0xb0] sm:$0xff] }
 0x100   : > { %763 = vst [vmem:[#allocation2 + $0xa0] sm:$0xf] %v760_v31  ;;  %922 = vmatpush1.msra.mxu0 %v898_v32  ;;  %423 = vrot.lane.b32.xlu0 %v2163_v1, %s1940_s30 }
 0x101   : > { %425 = vrot.lane.b32.xlu1 %v2173_v3, %s1940_s30 }
 0x102   : > { %v769_v33 = vpop.permute.xlu0 %768  ;;  %v771_v34 = vpop.permute.xlu1 %770  ;;  %v1007_v35 = vld [vmem:[#allocation3 + $0xb8] sm:$0xff] }
 0x103   : > { %v772_v36 = vsel %vm759_vm5, %v769_v33, %v771_v34  ;;  %776 = vst.msk [vmem:[#allocation3 + $0xa8] sm:$0xf] %vm282_vm0, %v771_v34  ;;  %1024 = vmatprep.subr.mxu1 %v1007_v35  ;;  %v1006_v37 = vld [vmem:[#allocation3 + $0xb0] sm:$0xff] }
 0x104   : > { %775 = vst [vmem:[#allocation3 + $0xa0] sm:$0xf] %v772_v36  ;;  %1025 = vmatpush1.msra.mxu1 %v1006_v37  ;;  %436 = vrot.lane.b32.xlu0 %v2189_v5, %s1940_s30 }
 0x105   : > { %438 = vrot.lane.b32.xlu1 %v2163_v1, %s1940_s30 }
 0x106   : > { %v781_v38 = vpop.permute.xlu0 %780  ;;  %v783_v39 = vpop.permute.xlu1 %782 }
 0x107   : > { %v784_v40 = vsel %vm759_vm5, %v781_v38, %v783_v39  ;;  %788 = vst.msk [vmem:[#allocation2 + $0xa8] sm:$0xf0] %vm295_vm4, %v783_v39 }
 0x108   : > { %787 = vst [vmem:[#allocation2 + $0xa0] sm:$0xf0] %v784_v40  ;;  %448 = vrot.lane.b32.xlu0 %v2183_v4, %s1940_s30 }
 0x109   : > { %450 = vrot.lane.b32.xlu1 %v2160_v0, %s1940_s30 }
 0x10a   : > { %v793_v41 = vpop.permute.xlu0 %792  ;;  %v795_v42 = vpop.permute.xlu1 %794 }
 0x10b   : > { %v797_v43 = vsel %vm796_vm2, %v793_v41, %v795_v42  ;;  %801 = vst.msk [vmem:[#allocation3 + $0xa8] sm:$0xf0] %vm295_vm4, %v795_v42 }
 0x10c   : > { %800 = vst [vmem:[#allocation3 + $0xa0] sm:$0xf0] %v797_v43  ;;  %362 = vrot.lane.b32.xlu0 %v2163_v1, %s1943_s28 }
 0x10d   : > { %364 = vrot.lane.b32.xlu1 %v2173_v3, %s1943_s28 }
 0x10e   : > { %v707_v44 = vpop.permute.xlu0 %706  ;;  %v709_v45 = vpop.permute.xlu1 %708  ;;  %v897_v46 = vld [vmem:[#allocation2 + $0xa8] sm:$0xff] }
 0x10f   : > { %v710_v47 = vsel %vm673_vm6, %v707_v44, %v709_v45  ;;  %714 = vst.msk [vmem:[#allocation2 + $0x98] sm:$0xf] %vm282_vm0, %v709_v45  ;;  %923 = vmatprep.subr.mxu0 %v897_v46  ;;  %v896_v48 = vld [vmem:[#allocation2 + $0xa0] sm:$0xff] }
 0x110   : > { %713 = vst [vmem:[#allocation2 + $0x90] sm:$0xf] %v710_v47  ;;  %924 = vmatpush1.msra.mxu0 %v896_v48  ;;  %374 = vrot.lane.b32.xlu0 %v2160_v0, %s1943_s28 }
 0x111   : > { %376 = vrot.lane.b32.xlu1 %v2168_v2, %s1943_s28 }
 0x112   : > { %v719_v49 = vpop.permute.xlu0 %718  ;;  %v721_v50 = vpop.permute.xlu1 %720  ;;  %v1005_v51 = vld [vmem:[#allocation3 + $0xa8] sm:$0xff] }
 0x113   : > { %v723_v52 = vsel %vm722_vm7, %v719_v49, %v721_v50  ;;  %727 = vst.msk [vmem:[#allocation3 + $0x98] sm:$0xf] %vm282_vm0, %v721_v50  ;;  %1026 = vmatprep.subr.mxu1 %v1005_v51  ;;  %v1004_v53 = vld [vmem:[#allocation3 + $0xa0] sm:$0xff] }
 0x114   : > { %726 = vst [vmem:[#allocation3 + $0x90] sm:$0xf] %v723_v52  ;;  %1027 = vmatpush1.msra.mxu1 %v1004_v53  ;;  %386 = vrot.lane.b32.xlu0 %v2189_v5, %s1942_s2 }
 0x115   : > { %388 = vrot.lane.b32.xlu1 %v2163_v1, %s1942_s2 }
 0x116   : > { %v732_v54 = vpop.permute.xlu0 %731  ;;  %v734_v55 = vpop.permute.xlu1 %733 }
 0x117   : > { %v735_v56 = vsel %vm722_vm7, %v732_v54, %v734_v55  ;;  %739 = vst.msk [vmem:[#allocation2 + $0x98] sm:$0xf0] %vm295_vm4, %v734_v55 }
 0x118   : > { %738 = vst [vmem:[#allocation2 + $0x90] sm:$0xf0] %v735_v56  ;;  %399 = vrot.lane.b32.xlu0 %v2183_v4, %s1942_s2 }
 0x119   : > { %401 = vrot.lane.b32.xlu1 %v2160_v0, %s1942_s2 }
 0x11a   : > { %v744_v61 = vpop.permute.xlu0 %743  ;;  %v746_v62 = vpop.permute.xlu1 %745 }
 0x11b   : > { %v747_v63 = vsel %vm722_vm7, %v744_v61, %v746_v62  ;;  %751 = vst.msk [vmem:[#allocation3 + $0x98] sm:$0xf0] %vm295_vm4, %v746_v62 }
 0x11c   : > { %750 = vst [vmem:[#allocation3 + $0x90] sm:$0xf0] %v747_v63  ;;  %313 = vrot.lane.b32.xlu0 %v2163_v1, %s1944_s6 }
 0x11d   : > { %315 = vrot.lane.b32.xlu1 %v2173_v3, %s1944_s6 }
 0x11e   : > { %v658_v6 = vpop.permute.xlu0 %657  ;;  %v660_v7 = vpop.permute.xlu1 %659  ;;  %v895_v8 = vld [vmem:[#allocation2 + $0x98] sm:$0xff] }
 0x11f   : > { %v661_v10 = vsel %vm636_vm8, %v658_v6, %v660_v7  ;;  %665 = vst.msk [vmem:[#allocation2 + $0x88] sm:$0xf] %vm282_vm0, %v660_v7  ;;  %925 = vmatprep.subr.mxu0 %v895_v8  ;;  %v894_v11 = vld [vmem:[#allocation2 + $0x90] sm:$0xff] }
 0x120   : > { %664 = vst [vmem:[#allocation2 + $0x80] sm:$0xf] %v661_v10  ;;  %926 = vmatpush1.msra.mxu0 %v894_v11  ;;  %325 = vrot.lane.b32.xlu0 %v2160_v0, %s1944_s6 }
 0x121   : > { %327 = vrot.lane.b32.xlu1 %v2168_v2, %s1944_s6 }
 0x122   : > { %v670_v3 = vpop.permute.xlu0 %669  ;;  %v672_v12 = vpop.permute.xlu1 %671  ;;  %v1003_v13 = vld [vmem:[#allocation3 + $0x98] sm:$0xff] }
 0x123   : > { %v674_v14 = vsel %vm673_vm6, %v670_v3, %v672_v12  ;;  %678 = vst.msk [vmem:[#allocation3 + $0x88] sm:$0xf] %vm282_vm0, %v672_v12  ;;  %1028 = vmatprep.subr.mxu1 %v1003_v13  ;;  %v1002_v15 = vld [vmem:[#allocation3 + $0x90] sm:$0xff] }
 0x124   : > { %677 = vst [vmem:[#allocation3 + $0x80] sm:$0xf] %v674_v14  ;;  %1029 = vmatpush1.msra.mxu1 %v1002_v15  ;;  %337 = vrot.lane.b32.xlu0 %v2183_v4, %s1944_s6 }
 0x125   : > { %339 = vrot.lane.b32.xlu1 %v2160_v0, %s1944_s6 }
 0x126   : > { %v683_v2 = vpop.permute.xlu0 %682  ;;  %v685_v17 = vpop.permute.xlu1 %684 }
 0x127   : > { %v686_v18 = vsel %vm673_vm6, %v683_v2, %v685_v17  ;;  %690 = vst.msk [vmem:[#allocation2 + $0x88] sm:$0xf0] %vm295_vm4, %v685_v17 }
 0x128   : > { %689 = vst [vmem:[#allocation2 + $0x80] sm:$0xf0] %v686_v18  ;;  %349 = vrot.lane.b32.xlu0 %v2189_v5, %s1943_s28 }
 0x129   : > { %351 = vrot.lane.b32.xlu1 %v2163_v1, %s1943_s28 }
 0x12a   : > { %v695_v19 = vpop.permute.xlu0 %694  ;;  %v697_v4 = vpop.permute.xlu1 %696 }
 0x12b   : > { %v698_v20 = vsel %vm673_vm6, %v695_v19, %v697_v4  ;;  %702 = vst.msk [vmem:[#allocation3 + $0x88] sm:$0xf0] %vm295_vm4, %v697_v4 }
 0x12c   : > { %701 = vst [vmem:[#allocation3 + $0x80] sm:$0xf0] %v698_v20  ;;  %300 = vrot.lane.b32.xlu0 %v2189_v5, %s1944_s6 }
 0x12d   : > { %302 = vrot.lane.b32.xlu1 %v2163_v1, %s1944_s6 }
 0x12e   : > { %v609_v0 = vpop.permute.xlu0 %608  ;;  %v611_v21 = vpop.permute.xlu1 %610  ;;  %v893_v22 = vld [vmem:[#allocation2 + $0x88] sm:$0xff] }
 0x12f   : > { %v612_v23 = vsel %vm599_vm9, %v609_v0, %v611_v21  ;;  %616 = vst.msk [vmem:[#allocation2 + $0x78] sm:$0xf] %vm282_vm0, %v611_v21  ;;  %927 = vmatprep.subr.mxu0 %v893_v22  ;;  %v892_v24 = vld [vmem:[#allocation2 + $0x80] sm:$0xff] }
 0x130   : > { %615 = vst [vmem:[#allocation2 + $0x70] sm:$0xf] %v612_v23  ;;  %928 = vmatpush1.msra.mxu0 %v892_v24 }
 0x132   : > { %v621_v25 = vpop.permute.xlu0 %620  ;;  %v623_v26 = vpop.permute.xlu1 %622  ;;  %v1001_v27 = vld [vmem:[#allocation3 + $0x88] sm:$0xff] }
 0x133   : > { %v624_v5 = vsel %vm599_vm9, %v621_v25, %v623_v26  ;;  %628 = vst.msk [vmem:[#allocation3 + $0x78] sm:$0xf] %vm282_vm0, %v623_v26  ;;  %1030 = vmatprep.subr.mxu1 %v1001_v27  ;;  %v1000_v1 = vld [vmem:[#allocation3 + $0x80] sm:$0xff] }
 0x134   : > { %627 = vst [vmem:[#allocation3 + $0x70] sm:$0xf] %v624_v5  ;;  %1031 = vmatpush1.msra.mxu1 %v1000_v1 }
 0x136   : > { %v633_v28 = vpop.permute.xlu0 %632  ;;  %v635_v29 = vpop.permute.xlu1 %634 }
 0x137   : > { %v637_v30 = vsel %vm636_vm8, %v633_v28, %v635_v29  ;;  %641 = vst.msk [vmem:[#allocation2 + $0x78] sm:$0xf0] %vm295_vm4, %v635_v29 }
 0x138   : > { %640 = vst [vmem:[#allocation2 + $0x70] sm:$0xf0] %v637_v30 }
 0x13a   : > { %v646_v31 = vpop.permute.xlu0 %645  ;;  %v648_v32 = vpop.permute.xlu1 %647 }
 0x13b   : > { %v649_v33 = vsel %vm636_vm8, %v646_v31, %v648_v32  ;;  %653 = vst.msk [vmem:[#allocation3 + $0x78] sm:$0xf0] %vm295_vm4, %v648_v32 }
 0x13c   : > { %652 = vst [vmem:[#allocation3 + $0x70] sm:$0xf0] %v649_v33 }
 0x13e   : > { %v560_v34 = vpop.permute.xlu0 %559  ;;  %v562_v35 = vpop.permute.xlu1 %561  ;;  %v891_v36 = vld [vmem:[#allocation2 + $0x78] sm:$0xff] }
 0x13f   : > { %v563_v37 = vsel %vm550_vm10, %v560_v34, %v562_v35  ;;  %567 = vst.msk [vmem:[#allocation2 + $0x68] sm:$0xf] %vm282_vm0, %v562_v35  ;;  %929 = vmatprep.subr.mxu0 %v891_v36  ;;  %v890_v38 = vld [vmem:[#allocation2 + $0x70] sm:$0xff] }
 0x140   : > { %566 = vst [vmem:[#allocation2 + $0x60] sm:$0xf] %v563_v37  ;;  %930 = vmatpush1.msra.mxu0 %v890_v38 }
 0x142   : > { %v572_v39 = vpop.permute.xlu0 %571  ;;  %v574_v40 = vpop.permute.xlu1 %573  ;;  %v999_v41 = vld [vmem:[#allocation3 + $0x78] sm:$0xff] }
 0x143   : > { %v575_v42 = vsel %vm550_vm10, %v572_v39, %v574_v40  ;;  %579 = vst.msk [vmem:[#allocation3 + $0x68] sm:$0xf] %vm282_vm0, %v574_v40  ;;  %1032 = vmatprep.subr.mxu1 %v999_v41  ;;  %v998_v43 = vld [vmem:[#allocation3 + $0x70] sm:$0xff] }
 0x144   : > { %578 = vst [vmem:[#allocation3 + $0x60] sm:$0xf] %v575_v42  ;;  %1033 = vmatpush1.msra.mxu1 %v998_v43 }
 0x146   : > { %v584_v44 = vpop.permute.xlu0 %583  ;;  %v586_v45 = vpop.permute.xlu1 %585 }
 0x147   : > { %v587_v46 = vsel %vm550_vm10, %v584_v44, %v586_v45  ;;  %591 = vst.msk [vmem:[#allocation2 + $0x68] sm:$0xf0] %vm295_vm4, %v586_v45 }
 0x148   : > { %590 = vst [vmem:[#allocation2 + $0x60] sm:$0xf0] %v587_v46 }
 0x14a   : > { %v596_v47 = vpop.permute.xlu0 %595  ;;  %v598_v48 = vpop.permute.xlu1 %597 }
 0x14b   : > { %v600_v49 = vsel %vm599_vm9, %v596_v47, %v598_v48  ;;  %604 = vst.msk [vmem:[#allocation3 + $0x68] sm:$0xf0] %vm295_vm4, %v598_v48 }
 0x14c   : > { %603 = vst [vmem:[#allocation3 + $0x60] sm:$0xf0] %v600_v49 }
 0x14e   : > { %v510_v50 = vpop.permute.xlu0 %509  ;;  %v512_v51 = vpop.permute.xlu1 %511  ;;  %v889_v52 = vld [vmem:[#allocation2 + $0x68] sm:$0xff] }
 0x14f   : > { %v514_v53 = vsel %vm513_vm11, %v510_v50, %v512_v51  ;;  %518 = vst.msk [vmem:[#allocation2 + $0x58] sm:$0xf] %vm282_vm0, %v512_v51  ;;  %931 = vmatprep.subr.mxu0 %v889_v52  ;;  %v888_v54 = vld [vmem:[#allocation2 + $0x60] sm:$0xff] }
 0x150   : > { %517 = vst [vmem:[#allocation2 + $0x50] sm:$0xf] %v514_v53  ;;  %932 = vmatpush1.msra.mxu0 %v888_v54 }
 0x152   : > { %v523_v55 = vpop.permute.xlu0 %522  ;;  %v525_v56 = vpop.permute.xlu1 %524  ;;  %v997_v57 = vld [vmem:[#allocation3 + $0x68] sm:$0xff] }
 0x153   : > { %v526_v58 = vsel %vm513_vm11, %v523_v55, %v525_v56  ;;  %530 = vst.msk [vmem:[#allocation3 + $0x58] sm:$0xf] %vm282_vm0, %v525_v56  ;;  %1034 = vmatprep.subr.mxu1 %v997_v57  ;;  %v996_v59 = vld [vmem:[#allocation3 + $0x60] sm:$0xff] }
 0x154   : > { %529 = vst [vmem:[#allocation3 + $0x50] sm:$0xf] %v526_v58  ;;  %1035 = vmatpush1.msra.mxu1 %v996_v59 }
 0x156   : > { %v535_v60 = vpop.permute.xlu0 %534  ;;  %v537_v61 = vpop.permute.xlu1 %536 }
 0x157   : > { %v538_v62 = vsel %vm513_vm11, %v535_v60, %v537_v61  ;;  %542 = vst.msk [vmem:[#allocation2 + $0x58] sm:$0xf0] %vm295_vm4, %v537_v61 }
 0x158   : > { %541 = vst [vmem:[#allocation2 + $0x50] sm:$0xf0] %v538_v62 }
 0x15a   : > { %v547_v63 = vpop.permute.xlu0 %546  ;;  %v549_v6 = vpop.permute.xlu1 %548 }
 0x15b   : > { %v551_v7 = vsel %vm550_vm10, %v547_v63, %v549_v6  ;;  %555 = vst.msk [vmem:[#allocation3 + $0x58] sm:$0xf0] %vm295_vm4, %v549_v6 }
 0x15c   : > { %554 = vst [vmem:[#allocation3 + $0x50] sm:$0xf0] %v551_v7 }
 0x15e   : > { %v461_v8 = vpop.permute.xlu0 %460  ;;  %v463_v9 = vpop.permute.xlu1 %462  ;;  %v887_v10 = vld [vmem:[#allocation2 + $0x58] sm:$0xff] }
 0x15f   : > { %v464_v11 = vsel %vm427_vm12, %v461_v8, %v463_v9  ;;  %468 = vst.msk [vmem:[#allocation2 + $0x48] sm:$0xf] %vm282_vm0, %v463_v9  ;;  %933 = vmatprep.subr.mxu0 %v887_v10  ;;  %v886_v3 = vld [vmem:[#allocation2 + $0x50] sm:$0xff] }
 0x160   : > { %467 = vst [vmem:[#allocation2 + $0x40] sm:$0xf] %v464_v11  ;;  %934 = vmatpush1.msra.mxu0 %v886_v3  ;;  %v877_v3 = vld [vmem:[#allocation2 + $0x8] sm:$0xff] }
 0x162   : > { %v473_v12 = vpop.permute.xlu0 %472  ;;  %v475_v13 = vpop.permute.xlu1 %474  ;;  %v995_v14 = vld [vmem:[#allocation3 + $0x58] sm:$0xff] }
 0x163   : > { %v477_v15 = vsel %vm476_vm13, %v473_v12, %v475_v13  ;;  %481 = vst.msk [vmem:[#allocation3 + $0x48] sm:$0xf] %vm282_vm0, %v475_v13  ;;  %1036 = vmatprep.subr.mxu1 %v995_v14  ;;  %v994_v2 = vld [vmem:[#allocation3 + $0x50] sm:$0xff] }
 0x164   : > { %480 = vst [vmem:[#allocation3 + $0x40] sm:$0xf] %v477_v15  ;;  %1037 = vmatpush1.msra.mxu1 %v994_v2  ;;  %v876_v14 = vld [vmem:[#allocation2] sm:$0xff]  ;;  %v875_v15 = vld [vmem:[#allocation12] sm:$0xff] }
 0x166   : > { %v486_v17 = vpop.permute.xlu0 %485 }
 0x167   : > { %v488_v18 = vpop.permute.xlu1 %487 }
 0x168   : > { %v489_v19 = vsel %vm476_vm13, %v486_v17, %v488_v18  ;;  %493 = vst.msk [vmem:[#allocation2 + $0x48] sm:$0xf0] %vm295_vm4, %v488_v18 }
 0x169   : > { %492 = vst [vmem:[#allocation2 + $0x40] sm:$0xf0] %v489_v19 }
 0x16a   : > { %v498_v4 = vpop.permute.xlu0 %497 }
 0x16b   : > { %v500_v20 = vpop.permute.xlu1 %499 }
 0x16c   : > { %v501_v0 = vsel %vm476_vm13, %v498_v4, %v500_v20  ;;  %505 = vst.msk [vmem:[#allocation3 + $0x48] sm:$0xf0] %vm295_vm4, %v500_v20  ;;  %v1087_v4 = vlaneseq  ;;  %vm1130_vm13 = vcmask 261120  }
 0x16d   : > { %504 = vst [vmem:[#allocation3 + $0x40] sm:$0xf0] %v501_v0 }
 0x16e   : > { %v412_v21 = vpop.permute.xlu0 %411  ;;  %v2423_v20 = vand.u32 127, %v1087_v4 }
 0x16f   : > { %v414_v22 = vpop.permute.xlu1 %413  ;;  %v885_v23 = vld [vmem:[#allocation2 + $0x48] sm:$0xff] }
 0x170   : > { %v415_v24 = vsel %vm390_vm14, %v412_v21, %v414_v22  ;;  %419 = vst.msk [vmem:[#allocation2 + $0x38] sm:$0xf] %vm282_vm0, %v414_v22  ;;  %935 = vmatprep.subr.mxu0 %v885_v23  ;;  %v884_v25 = vld [vmem:[#allocation2 + $0x40] sm:$0xff]  ;;  %v2426_v0 = vadd.s32 128, %v2423_v20 }
 0x171   : > { %418 = vst [vmem:[#allocation2 + $0x30] sm:$0xf] %v415_v24  ;;  %936 = vmatpush1.msra.mxu0 %v884_v25  ;;  %v2433_v23 = vmul.u32.u64.low 3435973837, %v2423_v20  ;;  %v2434_v24 = vmul.u32.u64.high 3435973837, %v2423_v20, %v2433_v23 }
 0x172   : > { %v424_v26 = vpop.permute.xlu0 %423  ;;  %v2429_v21 = vmul.u32.u64.low 3435973837, %v2426_v0  ;;  %v2430_v22 = vmul.u32.u64.high 3435973837, %v2426_v0, %v2429_v21 }
 0x173   : > { %v426_v27 = vpop.permute.xlu1 %425  ;;  %v993_v5 = vld [vmem:[#allocation3 + $0x48] sm:$0xff] }
 0x174   : > { %v428_v1 = vsel %vm427_vm12, %v424_v26, %v426_v27  ;;  %432 = vst.msk [vmem:[#allocation3 + $0x38] sm:$0xf] %vm282_vm0, %v426_v27  ;;  %1038 = vmatprep.subr.mxu1 %v993_v5  ;;  %v992_v28 = vld [vmem:[#allocation3 + $0x40] sm:$0xff]  ;;  %v1107_v25 = vshrl.u32 %v2430_v22, 3  ;;  %v1096_v26 = vshrl.u32 %v2434_v24, 3 }
 0x175   : > { %431 = vst [vmem:[#allocation3 + $0x30] sm:$0xf] %v428_v1  ;;  %1039 = vmatpush1.msra.mxu1 %v992_v28 }
 0x176   : > { %v437_v29 = vpop.permute.xlu0 %436  ;;  %v1108_v27 = vmul.u32 10, %v1107_v25  ;;  %v1097_v5 = vmul.u32 10, %v1096_v26 }
 0x177   : > { %v439_v30 = vpop.permute.xlu1 %438 }
 0x178   : > { %v440_v31 = vsel %vm427_vm12, %v437_v29, %v439_v30  ;;  %444 = vst.msk [vmem:[#allocation2 + $0x38] sm:$0xf0] %vm295_vm4, %v439_v30  ;;  %v1109_v1 = vsub.s32 %v2426_v0, %v1108_v27  ;;  %v1098_v28 = vsub.s32 %v2423_v20, %v1097_v5 }
 0x179   : > { %443 = vst [vmem:[#allocation2 + $0x30] sm:$0xf0] %v440_v31 }
 0x17a   : > { %v449_v32 = vpop.permute.xlu0 %448  ;;  %vm1113_vm2 = vcmp.ne.s32.totalorder %v1109_v1, 0  ;;  %vm1115_vm3 = vcmp.lt.s32.totalorder %v1109_v1, 0  ;;  %vm1114_vm5 = vcmp.lt.s32.totalorder %v1098_v28, 0  ;;  %v1119_v29 = vadd.s32 10, %v1109_v1 }
 0x17b   : > { %v451_v33 = vpop.permute.xlu1 %450  ;;  %vm1117_vm6 = vmand %vm1115_vm3, %vm1113_vm2  ;;  %v1118_v30 = vadd.s32 10, %v1098_v28  ;;  %vm1178_vm2 = vcmask 80896  }
 0x17c   : > { %v452_v34 = vsel %vm427_vm12, %v449_v32, %v451_v33  ;;  %456 = vst.msk [vmem:[#allocation3 + $0x38] sm:$0xf0] %vm295_vm4, %v451_v33  ;;  %v2440_v31 = vsel %vm1117_vm6, %v1119_v29, %v1109_v1  ;;  %vm1216_vm6 = vcmask 1047640  }
 0x17d   : > { %455 = vst [vmem:[#allocation3 + $0x30] sm:$0xf0] %v452_v34  ;;  %vm1123_vm8 = vcmp.lt.s32.totalorder %v2440_v31, 8  ;;  %1179 = vst.msk [vmem:[#allocation4] sm:$0xff] %vm1178_vm2, %v1945_v16  ;;  %vm1200_vm3 = vcmp.eq.s32.totalorder %v2440_v31, 9 }
 0x17e   : > { %v363_v35 = vpop.permute.xlu0 %362 }
 0x17f   : > { %v365_v36 = vpop.permute.xlu1 %364  ;;  %v883_v37 = vld [vmem:[#allocation2 + $0x38] sm:$0xff] }
 0x180   : > { %v366_v38 = vsel %vm353_vm15, %v363_v35, %v365_v36  ;;  %370 = vst.msk [vmem:[#allocation2 + $0x28] sm:$0xf] %vm282_vm0, %v365_v36  ;;  %937 = vmatprep.subr.mxu0 %v883_v37  ;;  %v882_v39 = vld [vmem:[#allocation2 + $0x30] sm:$0xff] }
 0x181   : > { %369 = vst [vmem:[#allocation2 + $0x20] sm:$0xf] %v366_v38  ;;  %938 = vmatpush1.msra.mxu0 %v882_v39 }
 0x182   : > { %v375_v40 = vpop.permute.xlu0 %374 }
 0x183   : > { %v377_v41 = vpop.permute.xlu1 %376  ;;  %v991_v42 = vld [vmem:[#allocation3 + $0x38] sm:$0xff] }
 0x184   : > { %v378_v43 = vsel %vm353_vm15, %v375_v40, %v377_v41  ;;  %382 = vst.msk [vmem:[#allocation3 + $0x28] sm:$0xf] %vm282_vm0, %v377_v41  ;;  %1040 = vmatprep.subr.mxu1 %v991_v42  ;;  %v990_v44 = vld [vmem:[#allocation3 + $0x30] sm:$0xff] }
 0x185   : > { %381 = vst [vmem:[#allocation3 + $0x20] sm:$0xf] %v378_v43  ;;  %1041 = vmatpush1.msra.mxu1 %v990_v44 }
 0x186   : > { %v387_v45 = vpop.permute.xlu0 %386 }
 0x187   : > { %v389_v46 = vpop.permute.xlu1 %388 }
 0x188   : > { %v391_v47 = vsel %vm390_vm14, %v387_v45, %v389_v46  ;;  %395 = vst.msk [vmem:[#allocation2 + $0x28] sm:$0xf0] %vm295_vm4, %v389_v46 }
 0x189   : > { %394 = vst [vmem:[#allocation2 + $0x20] sm:$0xf0] %v391_v47 }
 0x18a   : > { %v400_v48 = vpop.permute.xlu0 %399 }
 0x18b   : > { %v402_v49 = vpop.permute.xlu1 %401 }
 0x18c   : > { %v403_v50 = vsel %vm390_vm14, %v400_v48, %v402_v49  ;;  %407 = vst.msk [vmem:[#allocation3 + $0x28] sm:$0xf0] %vm295_vm4, %v402_v49 }
 0x18d   : > { %406 = vst [vmem:[#allocation3 + $0x20] sm:$0xf0] %v403_v50 }
 0x18e   : > { %v314_v51 = vpop.permute.xlu0 %313 }
 0x18f   : > { %v316_v52 = vpop.permute.xlu1 %315  ;;  %v881_v53 = vld [vmem:[#allocation2 + $0x28] sm:$0xff] }
 0x190   : > { %v317_v54 = vsel %vm304_vm1, %v314_v51, %v316_v52  ;;  %321 = vst.msk [vmem:[#allocation2 + $0x18] sm:$0xf] %vm282_vm0, %v316_v52  ;;  %939 = vmatprep.subr.mxu0 %v881_v53  ;;  %v880_v55 = vld [vmem:[#allocation2 + $0x20] sm:$0xff] }
 0x191   : > { %320 = vst [vmem:[#allocation2 + $0x10] sm:$0xf] %v317_v54  ;;  %940 = vmatpush1.msra.mxu0 %v880_v55 }
 0x192   : > { %v326_v56 = vpop.permute.xlu0 %325 }
 0x193   : > { %v328_v57 = vpop.permute.xlu1 %327  ;;  %v989_v58 = vld [vmem:[#allocation3 + $0x28] sm:$0xff] }
 0x194   : > { %v329_v59 = vsel %vm304_vm1, %v326_v56, %v328_v57  ;;  %333 = vst.msk [vmem:[#allocation3 + $0x18] sm:$0xf] %vm282_vm0, %v328_v57  ;;  %1042 = vmatprep.subr.mxu1 %v989_v58  ;;  %v988_v60 = vld [vmem:[#allocation3 + $0x20] sm:$0xff]  ;;  %vm902_vm0 = vcmask 818176  }
 0x195   : > { %332 = vst [vmem:[#allocation3 + $0x10] sm:$0xf] %v329_v59  ;;  %1043 = vmatpush1.msra.mxu1 %v988_v60 }
 0x196   : > { %v338_v61 = vpop.permute.xlu0 %337 }
 0x197   : > { %v340_v62 = vpop.permute.xlu1 %339 }
 0x198   : > { %v341_v63 = vsel %vm304_vm1, %v338_v61, %v340_v62  ;;  %345 = vst.msk [vmem:[#allocation2 + $0x18] sm:$0xf0] %vm295_vm4, %v340_v62 }
 0x199   : > { %344 = vst [vmem:[#allocation2 + $0x10] sm:$0xf0] %v341_v63 }
 0x19a   : > { %v350_v6 = vpop.permute.xlu0 %349 }
 0x19b   : > { %v352_v7 = vpop.permute.xlu1 %351 }
 0x19c   : > { %v354_v8 = vsel %vm353_vm15, %v350_v6, %v352_v7  ;;  %358 = vst.msk [vmem:[#allocation3 + $0x18] sm:$0xf0] %vm295_vm4, %v352_v7  ;;  %vm1182_vm15 = vcmask 89088  }
 0x19d   : > { %357 = vst [vmem:[#allocation3 + $0x10] sm:$0xf0] %v354_v8  ;;  %1183 = vst.msk [vmem:[#allocation5] sm:$0xff] %vm1182_vm15, %v1945_v16 }
 0x19e   : > { %v301_v9 = vpop.permute.xlu0 %300 }
 0x19f   : > { %v303_v10 = vpop.permute.xlu1 %302  ;;  %v879_v11 = vld [vmem:[#allocation2 + $0x18] sm:$0xff] }
 0x1a0   : > { %309 = vst.msk [vmem:[#allocation3 + $0x8] sm:$0xf0] %vm295_vm4, %v303_v10  ;;  %v305_v12 = vsel %vm304_vm1, %v301_v9, %v303_v10  ;;  %941 = vmatprep.subr.mxu0 %v879_v11  ;;  %v878_v13 = vld [vmem:[#allocation2 + $0x10] sm:$0xff]  ;;  %vm1112_vm4 = vcmp.ne.s32.totalorder %v1098_v28, 0 }
 0x1a1   : > { %308 = vst [vmem:[#allocation3] sm:$0xf0] %v305_v12  ;;  %942 = vmatpush1.msra.mxu0 %v878_v13  ;;  %vm1116_vm7 = vmand %vm1114_vm5, %vm1112_vm4  ;;  %vm1180_vm5 = vcmask 507216  }
 0x1a2   : > { %943 = vmatprep.subr.mxu0 %v877_v3  ;;  %v2442_v32 = vsel %vm1116_vm7, %v1118_v30, %v1098_v28  ;;  %1181 = vst.msk [vmem:[#allocation4 + $0x8] sm:$0xff] %vm1180_vm5, %v1945_v16  ;;  %vm1218_vm7 = vcmask 351232  }
 0x1a3   : > { %944 = vmatpush1.msra.mxu0 %v876_v14  ;;  %v987_v2 = vld [vmem:[#allocation3 + $0x18] sm:$0xff]  ;;  %vm1122_vm9 = vcmp.lt.s32.totalorder %v2442_v32, 8  ;;  %vm1199_vm4 = vcmp.eq.s32.totalorder %v2442_v32, 9 }
 0x1a4   : > { %1626 = vmatmul.mubr.msk.f32.vlgmr.msra.gmra.mxu0 %vm902_vm0, %v875_v15  ;;  %1044 = vmatprep.subr.mxu1 %v987_v2  ;;  %v986_v17 = vld [vmem:[#allocation3 + $0x10] sm:$0xff] }
 0x1a5   : > { %1045 = vmatpush1.msra.mxu1 %v986_v17  ;;  %1406 = vmatprep.mubr.f32.mxu0 %v1945_v16 }
 0x1a7   : > { %v985_v18 = vld [vmem:[#allocation3 + $0x8] sm:$0xff] }
 0x1a8   : > { %1046 = vmatprep.subr.mxu1 %v985_v18  ;;  %v984_v19 = vld [vmem:[#allocation3] sm:$0xff] }
 0x1a9   : > { %1047 = vmatpush1.msra.mxu1 %v984_v19 }
 0x1aa   : > { %1629 = vmatmul.mubr.msk.f32.vlgmr.msra.gmra.mxu1 %vm902_vm0, %v875_v15  ;;  %vm1184_vm0 = vcmask 507224  }
 0x1ab   : > { %1185 = vst.msk [vmem:[#allocation5 + $0x8] sm:$0xff] %vm1184_vm0, %v1945_v16 }
 0x264   : > { %v2444_v33 = vpop.f32.mrf.mxu0 }
 0x265   : > { %v1142_v37 = vmul.f32 %v2444_v33, %v2444_v33  ;;  %v1128_v38 = vsel %vm1122_vm9, %v2444_v33, 0.0 }
 0x266   : > { %v2448_v34 = vpop.f32.mrf.mxu0 }
 0x267   : > { %v1143_v35 = vmul.f32 %v2448_v34, %v2448_v34  ;;  %v1129_v36 = vsel %vm1123_vm8, %v2448_v34, 0.0  ;;  %v1144_v46 = vsel %vm1122_vm9, %v1142_v37, 0.0 }
 0x268   : > { %v1131_v39 = vsel %vm1130_vm13, %v1129_v36, 0.0 }
 0x269   : > { %v1132_v40 = vadd.f32 %v1131_v39, %v1128_v38  ;;  %v1145_v41 = vsel %vm1123_vm8, %v1143_v35, 0.0 }
 0x26a   : > { %v1082_v42 = vpop.f32.mrf.mxu1  ;;  %v1146_v43 = vsel %vm1130_vm13, %v1145_v41, 0.0 }
 0x26b   : > { %1133 = vadd.xlane.f32.xlu0 %v1132_v40  ;;  %v1150_v44 = vmul.f32 %v1082_v42, %v1082_v42  ;;  %v1147_v49 = vadd.f32 %v1146_v43, %v1144_v46  ;;  %v1135_v50 = vsel %vm1122_vm9, %v1082_v42, 0.0 }
 0x26c   : > { %v1084_v45 = vpop.f32.mrf.mxu1 }
 0x26d   : > { %v1136_v47 = vsel %vm1123_vm8, %v1084_v45, 0.0  ;;  %v1151_v48 = vmul.f32 %v1084_v45, %v1084_v45  ;;  %v1152_v55 = vsel %vm1122_vm9, %v1150_v44, 0.0  ;;  %vm1197_vm9 = vcmask 343040  }
 0x26e   : > { %v1137_v51 = vsel %vm1130_vm13, %v1136_v47, 0.0 }
 0x26f   : > { %v1153_v52 = vsel %vm1123_vm8, %v1151_v48, 0.0  ;;  %1148 = vadd.xlane.f32.xlu0 %v1147_v49  ;;  %v1138_v53 = vadd.f32 %v1137_v51, %v1135_v50  ;;  %vm1195_vm8 = vcmask 1047632  }
 0x270   : > { %v1154_v54 = vsel %vm1130_vm13, %v1153_v52, 0.0 }
 0x271   : > { %1139 = vadd.xlane.f32.xlu1 %v1138_v53  ;;  %v1155_v56 = vadd.f32 %v1154_v54, %v1152_v55 }
 0x273   : > { %1156 = vadd.xlane.f32.xlu0 %v1155_v56 }
 0x2f4   : > { %v1134_v57 = vpop.xlane.xlu0 %1133 }
 0x2f8   : > { %v1149_v58 = vpop.xlane.xlu0 %1148 }
 0x2fa   : > { %v1140_v59 = vpop.xlane.xlu1 %1139 }
 0x2fb   : > { %v1141_v60 = vadd.f32 %v1140_v59, %v1134_v57 }
 0x2fc   : > { %v1157_v61 = vpop.xlane.xlu0 %1156 }
 0x2fd   : > { %v1159_v62 = vmul.f32 0.00390625, %v1141_v60  ;;  %v1158_v63 = vadd.f32 %v1157_v61, %v1149_v58 }
 0x2ff   : > { %v1161_v6 = vmul.f32 %v1159_v62, %v1159_v62  ;;  %v1160_v7 = vmul.f32 0.00390625, %v1158_v63  ;;  %v1173_v11 = vsub.f32 %v1084_v45, %v1159_v62  ;;  %v1172_v3 = vsub.f32 %v1082_v42, %v1159_v62 }
 0x300   : > { %v1166_v15 = vsub.f32 %v2444_v33, %v1159_v62  ;;  %v1167_v21 = vsub.f32 %v2448_v34, %v1159_v62 }
 0x301   : > { %v1162_v8 = vsub.f32 %v1160_v7, %v1161_v6  ;;  %v1319_v6 = vld [vmem:[#allocation13] sm:$0xff]  ;;  %v1430_v7 = vshrl.u32 %v2430_v22, 4 }
 0x303   : > { %v1163_v9 = vmax.f32 %v1162_v8, 0.0  ;;  %v1419_v8 = vshrl.u32 %v2434_v24, 4 }
 0x305   : > { %v1164_v10 = vadd.f32 1e-05, %v1163_v9  ;;  %v1431_v9 = vmul.u32 20, %v1430_v7 }
 0x307   : > { %1737 = vrsqrt.f32 %v1164_v10  ;;  %v1420_v10 = vmul.u32 20, %v1419_v8 }
 0x314   : > { %v1738_v12 = vpop.eup %1737 }
 0x315   : > { %v1175_v13 = vmul.f32 %v1738_v12, %v1173_v11  ;;  %v1174_v14 = vmul.f32 %v1738_v12, %v1172_v3  ;;  %v1168_v18 = vmul.f32 %v1738_v12, %v1166_v15  ;;  %v1169_v25 = vmul.f32 %v1738_v12, %v1167_v21 }
 0x316   : > { %v1432_v11 = vsub.s32 %v2426_v0, %v1431_v9  ;;  %v1421_v3 = vsub.s32 %v2423_v20, %v1420_v10 }
 0x317   : > { %v1177_v2 = vmax.f32 %v1175_v13, 0.0  ;;  %v1176_v17 = vmax.f32 %v1174_v14, 0.0  ;;  %v1170_v23 = vmax.f32 %v1168_v18, 0.0  ;;  %v1171_v26 = vmax.f32 %v1169_v25, 0.0 }
 0x318   : > { %v1442_v12 = vadd.s32 20, %v1432_v11  ;;  %v1441_v13 = vadd.s32 20, %v1421_v3 }
 0x319   : > { %v1206_v19 = vsel %vm1200_vm3, 0.0, %v1177_v2  ;;  %v1205_v4 = vsel %vm1199_vm4, 0.0, %v1176_v17 }
 0x31a   : > { %1211 = vrot.lane.b32.xlu0 %v1206_v19, %s1946_s5  ;;  %1209 = vrot.lane.b32.xlu1 %v1205_v4, %s1946_s5 }
 0x31e   : > { %1188 = vrot.lane.b32.xlu1 %v1170_v23, %s1947_s23 }
 0x322   : > { %1190 = vrot.lane.b32.xlu1 %v1171_v26, %s1947_s23 }
 0x38c   : > { %v1212_v27 = vpop.permute.xlu0 %1211  ;;  %v1210_v5 = vpop.permute.xlu1 %1209 }
 0x38d   : > { %v1213_v16 = vsel %vm1182_vm15, %v1210_v5, %v1212_v27  ;;  %1217 = vst.msk [vmem:[#allocation5] sm:$0xff] %vm1216_vm6, %v1210_v5 }
 0x38e   : > { %1219 = vst.msk [vmem:[#allocation5 + $0x8] sm:$0xff] %vm1218_vm7, %v1213_v16 }
 0x390   : > { %v1189_v1 = vpop.permute.xlu1 %1188 }
 0x391   : > { %1196 = vst.msk [vmem:[#allocation4] sm:$0xff] %vm1195_vm8, %v1189_v1 }
 0x394   : > { %v2487_v28 = vld [vmem:[#allocation5] sm:$0xff]  ;;  %v1191_v29 = vpop.permute.xlu1 %1190 }
 0x395   : > { %v1192_v30 = vsel %vm1178_vm2, %v1189_v1, %v1191_v29  ;;  %v1307_v31 = vld [vmem:[#allocation5 + $0x8] sm:$0xff] }
 0x396   : > { %1198 = vst.msk [vmem:[#allocation4 + $0x8] sm:$0xff] %vm1197_vm9, %v1192_v30 }
 0x397   : > { %1223 = vst.msk [vmem:[#allocation6 + $0x8] sm:$0xff] %vm1130_vm13, %v1307_v31 }
 0x398   : > { %v2491_v32 = vld [vmem:[#allocation4] sm:$0xff] }
 0x399   : > { %1297 = vrot.lane.b32.xlu0 %v2491_v32, %s1939_s27 }
 0x39d   : > { %1258 = vrot.lane.b32.xlu0 %v2491_v32, %s1942_s2  ;;  %v1294_v33 = vld [vmem:[#allocation4 + $0x8] sm:$0xff] }
 0x39e   : > { %1299 = vrot.lane.b32.xlu1 %v1294_v33, %s1939_s27  ;;  %1227 = vst.msk [vmem:[#allocation6 + $0x18] sm:$0xff] %vm1130_vm13, %v1294_v33  ;;  %v1321_v63 = vld [vmem:[#allocation6 + $0x8] sm:$0xff] }
 0x3a1   : > { %1310 = vrot.lane.b32.xlu0 %v2487_v28, %s1938_s20 }
 0x3a2   : > { %1260 = vrot.lane.b32.xlu1 %v1294_v33, %s1942_s2 }
 0x3a5   : > { %1284 = vrot.lane.b32.xlu0 %v2487_v28, %s1939_s27  ;;  %v1323_v62 = vld [vmem:[#allocation6 + $0x18] sm:$0xff] }
 0x3a6   : > { %1312 = vrot.lane.b32.xlu1 %v1307_v31, %s1938_s20  ;;  %s1849_s20 = scalar_lea.vmem %s1496_s26, 256 }
 0x3a7   : > { %p1850_p6 = scmp.ne.s32.totalorder %s1496_s26, %s1849_s20 }
 0x3a9   : > { %1271 = vrot.lane.b32.xlu0 %v2487_v28, %s1940_s30  ;;  %p1851_p12 = pnand %p1850_p6, %p2604_p8 }
 0x3aa   : > { %1286 = vrot.lane.b32.xlu1 %v1307_v31, %s1939_s27  ;;  %s1853_s27 = sshll.u32 %s1948_s19, 4  ;;  %s1854_s27 = int_to_ptr.vmem [resolvable:$false] %s1853_s27 }
 0x3ab   : > { %p1852_p3 = pneg %p1851_p12  ;;  %p1856_p7 = scmp.lt.s32.totalorder %s1496_s26, %s1854_s27 }
 0x3ad   : > { %1245 = vrot.lane.b32.xlu0 %v2487_v28, %s1942_s2 }
 0x3ae   : > { %1273 = vrot.lane.b32.xlu1 %v1307_v31, %s1940_s30  ;;  %s1855_s30 = scalar_lea.vmem %s1854_s27, 512 }
 0x3af   : > { %p1857_p13 = scmp.lt.s32.totalorder %s1855_s30, %s1849_s20 }
 0x3b1   : > { %1232 = vrot.lane.b32.xlu0 %v2487_v28, %s1944_s6  ;;  %p1858_p10 = por %p1857_p13, %p1856_p7 }
 0x3b2   : > { %1247 = vrot.lane.b32.xlu1 %v1307_v31, %s1942_s2 }
 0x3b3   : > { %p1859_p0 = pnand %p1858_p10, %p1852_p3 }
 0x3b6   : > { %1234 = vrot.lane.b32.xlu1 %v1307_v31, %s1944_s6 }
 0x40b   : > { %v1298_v34 = vpop.permute.xlu0 %1297 }
 0x40f   : > { %v1259_v35 = vpop.permute.xlu0 %1258 }
 0x410   : > { %v1300_v36 = vpop.permute.xlu1 %1299 }
 0x411   : > { %v1301_v37 = vsel %vm513_vm11, %v1298_v34, %v1300_v36  ;;  %1305 = vst.msk [vmem:[#allocation6 + $0x78] sm:$0xff] %vm1130_vm13, %v1300_v36 }
 0x413   : > { %v1311_v38 = vpop.permute.xlu0 %1310 }
 0x414   : > { %v1261_v39 = vpop.permute.xlu1 %1260 }
 0x415   : > { %v1262_v40 = vsel %vm390_vm14, %v1259_v35, %v1261_v39  ;;  %1266 = vst.msk [vmem:[#allocation6 + $0x48] sm:$0xff] %vm1130_vm13, %v1261_v39 }
 0x417   : > { %v1285_v41 = vpop.permute.xlu0 %1284 }
 0x418   : > { %v1313_v42 = vpop.permute.xlu1 %1312  ;;  %v1335_v51 = vld [vmem:[#allocation6 + $0x78] sm:$0xff] }
 0x419   : > { %v1314_v43 = vsel %vm550_vm10, %v1311_v38, %v1313_v42  ;;  %1318 = vst.msk [vmem:[#allocation6 + $0x88] sm:$0xff] %vm1130_vm13, %v1313_v42  ;;  %vm1338_vm10 = vcmask 588800  }
 0x41b   : > { %v1272_v44 = vpop.permute.xlu0 %1271 }
 0x41c   : > { %v1287_v45 = vpop.permute.xlu1 %1286  ;;  %v1329_v59 = vld [vmem:[#allocation6 + $0x48] sm:$0xff] }
 0x41d   : > { %v1288_v46 = vsel %vm513_vm11, %v1285_v41, %v1287_v45  ;;  %1292 = vst.msk [vmem:[#allocation6 + $0x68] sm:$0xff] %vm1130_vm13, %v1287_v45  ;;  %vm1436_vm11 = vcmp.ne.s32.totalorder %v1432_v11, 0 }
 0x41f   : > { %v1246_v50 = vpop.permute.xlu0 %1245 }
 0x420   : > { %v1274_v47 = vpop.permute.xlu1 %1273  ;;  %v1337_v48 = vld [vmem:[#allocation6 + $0x88] sm:$0xff] }
 0x421   : > { %v1275_v49 = vsel %vm427_vm12, %v1272_v44, %v1274_v47  ;;  %1279 = vst.msk [vmem:[#allocation6 + $0x58] sm:$0xff] %vm1130_vm13, %v1274_v47  ;;  %1356 = vmatprep.subr.mxu0 %v1337_v48  ;;  %vm1438_vm12 = vcmp.lt.s32.totalorder %v1432_v11, 0 }
 0x422   : > { %1357 = vmatpush1.msra.mxu0 %v1314_v43  ;;  %vm1440_vm15 = vmand %vm1438_vm12, %vm1436_vm11 }
 0x423   : > { %1358 = vmatprep.subr.mxu0 %v1335_v51  ;;  %v1233_v55 = vpop.permute.xlu0 %1232  ;;  %v1444_v14 = vsel %vm1440_vm15, %v1442_v12, %v1432_v11 }
 0x424   : > { %1359 = vmatpush1.msra.mxu0 %v1301_v37  ;;  %v1248_v52 = vpop.permute.xlu1 %1247  ;;  %v1333_v53 = vld [vmem:[#allocation6 + $0x68] sm:$0xff]  ;;  %vm1446_vm2 = vcmp.lt.s32.totalorder %v1444_v14, 8 }
 0x425   : > { %v1249_v54 = vsel %vm390_vm14, %v1246_v50, %v1248_v52  ;;  %1253 = vst.msk [vmem:[#allocation6 + $0x38] sm:$0xff] %vm1130_vm13, %v1248_v52  ;;  %1360 = vmatprep.subr.mxu0 %v1333_v53  ;;  %vm1435_vm14 = vcmp.ne.s32.totalorder %v1421_v3, 0 }
 0x426   : > { %1361 = vmatpush1.msra.mxu0 %v1288_v46 }
 0x428   : > { %v1235_v56 = vpop.permute.xlu1 %1234  ;;  %v1331_v57 = vld [vmem:[#allocation6 + $0x58] sm:$0xff] }
 0x429   : > { %v1236_v58 = vsel %vm304_vm1, %v1233_v55, %v1235_v56  ;;  %1240 = vst.msk [vmem:[#allocation6 + $0x28] sm:$0xff] %vm1130_vm13, %v1235_v56  ;;  %1362 = vmatprep.subr.mxu0 %v1331_v57  ;;  %vm1437_vm1 = vcmp.lt.s32.totalorder %v1421_v3, 0 }
 0x42a   : > { %1363 = vmatpush1.msra.mxu0 %v1275_v49  ;;  %vm1439_vm0 = vmand %vm1437_vm1, %vm1435_vm14 }
 0x42b   : > { %1364 = vmatprep.subr.mxu0 %v1329_v59  ;;  %v1443_v15 = vsel %vm1439_vm0, %v1441_v13, %v1421_v3 }
 0x42c   : > { %1365 = vmatpush1.msra.mxu0 %v1262_v40  ;;  %v1327_v60 = vld [vmem:[#allocation6 + $0x38] sm:$0xff]  ;;  %vm1445_vm3 = vcmp.lt.s32.totalorder %v1443_v15, 8 }
 0x42d   : > { %1366 = vmatprep.subr.mxu0 %v1327_v60 }
 0x42e   : > { %1367 = vmatpush1.msra.mxu0 %v1249_v54 }
 0x430   : > { %v1325_v61 = vld [vmem:[#allocation6 + $0x28] sm:$0xff] }
 0x431   : > { %1368 = vmatprep.subr.mxu0 %v1325_v61 }
 0x432   : > { %1369 = vmatpush1.msra.mxu0 %v1236_v58 }
 0x433   : > { %1370 = vmatprep.subr.mxu0 %v1323_v62 }
 0x434   : > { %1371 = vmatpush1.msra.mxu0 %v2491_v32 }
 0x435   : > { %1372 = vmatprep.subr.mxu0 %v1321_v63 }
 0x436   : > { %1373 = vmatpush1.msra.mxu0 %v2487_v28 }
 0x437   : > { %1630 = vmatmul.mubr.msk.f32.vlgmr.msra.gmra.mxu0 %vm1338_vm10, %v1319_v6 }
 0x4f7   : > { %v1408_v2 = vpop.f32.mrf.mxu0 }
 0x4f8   : > { %v1457_v22 = vmul.f32 %v1408_v2, %v1408_v2  ;;  %v1451_v0 = vsel %vm1445_vm3, %v1408_v2, 0.0 }
 0x4f9   : > { %v1410_v24 = vpop.f32.mrf.mxu0 }
 0x4fa   : > { %v1452_v17 = vsel %vm1446_vm2, %v1410_v24, 0.0  ;;  %v1458_v18 = vmul.f32 %v1410_v24, %v1410_v24  ;;  %v1459_v23 = vsel %vm1445_vm3, %v1457_v22, 0.0 }
 0x4fb   : > { %v1453_v20 = vsel %vm1130_vm13, %v1452_v17, 0.0 }
 0x4fc   : > { %v1454_v19 = vadd.f32 %v1453_v20, %v1451_v0  ;;  %v1460_v4 = vsel %vm1446_vm2, %v1458_v18, 0.0 }
 0x4fd   : > { %v1461_v21 = vsel %vm1130_vm13, %v1460_v4, 0.0 }
 0x4fe   : > { %1455 = vadd.xlane.f32.xlu0 %v1454_v19  ;;  %v1462_v25 = vadd.f32 %v1461_v21, %v1459_v23 }
 0x500   : > { %1463 = vadd.xlane.f32.xlu1 %v1462_v25 }
 0x587   : > { %v1456_v26 = vpop.xlane.xlu0 %1455 }
 0x588   : > { %v1465_v27 = vmul.f32 0.015625, %v1456_v26 }
 0x589   : > { %v1464_v5 = vpop.xlane.xlu1 %1463 }
 0x58a   : > { %v1466_v16 = vmul.f32 0.015625, %v1464_v5  ;;  %v1467_v1 = vmul.f32 %v1465_v27, %v1465_v27  ;;  %v1470_v31 = vsub.f32 %v1408_v2, %v1465_v27  ;;  %v1471_v32 = vsub.f32 %v1410_v24, %v1465_v27 }
 0x58c   : > { %v1468_v28 = vsub.f32 %v1466_v16, %v1467_v1 }
 0x58e   : > { %v1469_v29 = vmax.f32 %v1468_v28, 0.0 }
 0x590   : > { %v1472_v30 = vadd.f32 1e-05, %v1469_v29 }
 0x592   : > { %1739 = vrsqrt.f32 %v1472_v30 }
 0x59f   : > { %v1740_v33 = vpop.eup %1739 }
 0x5a0   : > { %v1474_v34 = vmul.f32 %v1740_v33, %v1470_v31  ;;  %v1475_v35 = vmul.f32 %v1740_v33, %v1471_v32 }
 0x5a2   : > { %v1476_v36 = vmax.f32 %v1474_v34, 0.0  ;;  %v1477_v37 = vmax.f32 %v1475_v35, 0.0 }
 0x5a4   : > { %1478 = vst [vmem:[%s276_s11] sm:$0xff] %v1476_v36  ;;  %1479 = vst.msk [vmem:[%s276_s11 + $0x8] sm:$0xff] %vm1130_vm13, %v1477_v37 }
 0x5a5   : > { %1862 = shalt.err (!%p1859_p0)
}
 0x5a6   : > { %s1863_s9 = scalar_lea.hbm %s2542_s7, 256  ;;  %s1867_s28 = scalar_lea.hbm %s2584_s4, 512 }
 0x5a7   : > { %p1864_p1 = scmp.ne.s32.totalorder %s2542_s7, %s1863_s9  ;;  %p1868_p11 = scmp.lt.s32.totalorder %s2542_s7, %s2584_s4 }
 0x5a8   : > { %p1869_p2 = scmp.lt.s32.totalorder %s1867_s28, %s1863_s9 }
 0x5a9   : > { %p1865_p5 = pnand %p1864_p1, %p2604_p8 }
 0x5aa   : > { %p1870_p4 = por %p1869_p2, %p1868_p11 }
 0x5ab   : > { %p1866_p9 = pneg %p1865_p5 }
 0x5ad   : > { %p1871_p6 = pnand %p1870_p4, %p1866_p9 }
 0x5af   : > { %1874 = shalt.err (!%p1871_p6)
}
 0x5b0   : > { %1655 = dma.vmem_to_hbm [thread:$0]  (%p2604_p8), %s1496_s26, 256, %s2542_s7, %s1481_s25  }
 0x5b1 PF: > { %s1507_s23 = sand.u32 1, %s1913_s15   ;;  %p2605_p12 = scmp.ne.s32.totalorder %s2591_s22, 0 }
 0x5b2   : > { %p2606_p3 = scmp.ge.s32.totalorder %s1925_s18, 2  ;;  %s1508_s8 = scalar_lea.sflag [#allocation9], %s1507_s23 }
 0x5b4   : > { %p1672_p7 = pnand %p2606_p3, %p2605_p12 }
 0x5b6   : > { %p1673_p13 = pneg %p1672_p7 }
 0x5b8   : > { %1908 = dma.done.wait (%p1673_p13), %s1508_s8, 256  }
 0x5b9   : > { %1910 = vsyncadd (%p1673_p13), %s1508_s8, 4294967040  ;;  %p21_p10 = scmp.ge.s32.totalorder %s2028_s29, 4   ;;  %s2607_s15 = smov %s1917_s16 }
 0x5ba   : > { %s2608_s16 = smov %s1921_s17  ;;  %s2609_s17 = smov %s2055_s12 }
 0x5bb   : > { %s2610_s18 = smov %s2028_s29  ;;  %23 = sbr.rel (!%p21_p10) target bundleno = 10 (0xa), region = 102 }
 0x5c0   :  { %1513 = vsyncpa [#allocation8], 1 }
 0x5c1   :  { %1515 = vsyncpa [#allocation8 + $0x1], 1 }
 0x5c2   :  { %1516 = vsyncpa [#allocation11], 1 }
 0x5c3   :  { %1518 = vsyncpa [#allocation11 + $0x1], 1 }
 0x5c4   :  { %1519 = vsyncpa [#allocation14], 1 }
 0x5c5   :  { %1520 = vsyncpa [#allocation9], 1 }
 0x5c6   :  { %1522 = vsyncpa [#allocation9 + $0x1], 1 }

</bundles_post_ra>
